<compile_context>
chip_gen: v7x
topology: tpu7x:2x2x1
jax: 0.10.0
libtpu: 0.0.40
codegen_flags: <defaults>
</compile_context>

<pallas_src>
import jax
import jax.numpy as jnp
from jax.experimental import pallas as pl
from jax.experimental.pallas import tpu as pltpu

LANE = 128


def _ceil_to(x, m):
    return ((x + m - 1) // m) * m


# ----------------------------- in-kernel helpers -----------------------------

def _lstm_stack_and_score(x, h_ref, c_ref, w_ref, b_ref, aw_ref, ab_ref,
                          h_out_ref, c_out_ref, logits_ref, act_ref):
    """All LSTM layers for one timestep, then the act-scorer, in one kernel.

    x       : (1, Fp)            current input (padding lanes are exactly zero)
    h_ref   : (L, 1, Hp)         previous hidden state; c_ref likewise
    w_ref   : (L, Fp+Hp, 4*Hp)   fused [W_ih ; W_hh] per layer, gate-blocks lane padded
    b_ref   : (L, 1, 4*Hp)       fused b_ih + b_hh per layer
    aw_ref  : (Hp, 128)          act-scorer weight (2 valid columns); ab_ref: (1, 128)
    """
    L = h_ref.shape[0]
    Hp = h_ref.shape[2]
    layer_in = x
    for l in range(L):                                        # static unroll over layers
        xh = jnp.concatenate([layer_in, h_ref[l]], axis=1)    # (1, Fp+Hp): one MXU pass
        gates = jnp.dot(xh, w_ref[l], preferred_element_type=jnp.float32) + b_ref[l]
        i = jax.nn.sigmoid(gates[:, 0 * Hp:1 * Hp])           # whole-vreg gate slices
        f = jax.nn.sigmoid(gates[:, 1 * Hp:2 * Hp])
        g = jnp.tanh(gates[:, 2 * Hp:3 * Hp])
        o = jax.nn.sigmoid(gates[:, 3 * Hp:4 * Hp])
        c_new = f * c_ref[l] + i * g
        h_new = o * jnp.tanh(c_new)
        h_out_ref[l] = h_new
        c_out_ref[l] = c_new
        layer_in = h_new

    # act-scorer for the NEXT step's decision, lane-dense (1, 128) output
    logits = jnp.dot(layer_in, aw_ref[...], preferred_element_type=jnp.float32) + ab_ref[...]
    logits_ref[...] = logits
    col = jax.lax.broadcasted_iota(jnp.int32, logits.shape, 1)
    l0 = jnp.sum(jnp.where(col == 0, logits, 0.0), axis=1, keepdims=True)
    l1 = jnp.sum(jnp.where(col == 1, logits, 0.0), axis=1, keepdims=True)
    # argmax over the 2 valid logits, broadcast lane-dense (ties -> action 0, like argmax)
    act_ref[...] = jnp.broadcast_to((l1 > l0).astype(jnp.int32), logits.shape)


def _shift_step_kernel(tok_ref, emb_ref, h_ref, c_ref, w_ref, b_ref, aw_ref, ab_ref,
                       shifted_ref, h_out_ref, c_out_ref, logits_ref, act_ref):
    del tok_ref                    # consumed by the embed BlockSpec index_map (row gather)
    x = emb_ref[0]                 # (1, Ep) gathered embedding row
    shifted_ref[...] = x
    _lstm_stack_and_score(x, h_ref, c_ref, w_ref, b_ref, aw_ref, ab_ref,
                          h_out_ref, c_out_ref, logits_ref, act_ref)


def _reduce_step_kernel(enc_r_ref, enc_l_ref, h_ref, c_ref,
                        rw1_ref, rb1_ref, rw2_ref, rb2_ref,
                        w_ref, b_ref, aw_ref, ab_ref,
                        enc_out_ref, h_out_ref, c_out_ref, logits_ref, act_ref):
    # reduce = Sequential(Linear(2E, E), ResLayer(E))
    # TODO(synk): ResLayer definition not provided in the source; assumed
    #             y = h + relu(h @ W + b) residual block.
    cat = jnp.concatenate([enc_r_ref[...], enc_l_ref[...]], axis=1)   # (1, 2*Ep), r then l
    hmid = jnp.dot(cat, rw1_ref[...], preferred_element_type=jnp.float32) + rb1_ref[...]
    res = jnp.maximum(
        jnp.dot(hmid, rw2_ref[...], preferred_element_type=jnp.float32) + rb2_ref[...], 0.0)
    enc_red = hmid + res
    enc_out_ref[...] = enc_red
    _lstm_stack_and_score(enc_red, h_ref, c_ref, w_ref, b_ref, aw_ref, ab_ref,
                          h_out_ref, c_out_ref, logits_ref, act_ref)


# ------------------------------ host-side glue ------------------------------

def straight_through(act_score, value):
    # Forward pass of a straight-through estimator is the identity on `value`.
    del act_score
    return value


def decide(act_logits, act_choice, force=None):
    # TODO(synk): `decide` was not provided in the source; standard shift-reduce
    # semantics assumed (forced action if given, else argmax over the 2 logits).
    # The chosen-action score is unused by forward (straight_through is identity),
    # so no softmax / extra sync is materialized.
    del act_logits
    if force is not None:
        return int(force), None
    # The only control-flow-critical device->host pull in a step (512 B).
    return int(jax.device_get(act_choice)[0, 0]), None


class Buffer:
    def __init__(self, items):
        self.items = list(items)

    def has_next(self):
        return len(self.items) > 0

    def pop(self):
        return self.items.pop(0)


def _uniform(key, shape, fan_in):
    bound = 1.0 / float(fan_in) ** 0.5
    return jax.random.uniform(key, shape, jnp.float32, -bound, bound)


def init_encoder_params(key, vocab_size, enc_size, lstm_size, lstm_layers):
    Ep = _ceil_to(enc_size, LANE)
    Hp = _ceil_to(lstm_size, LANE)
    assert Ep == Hp, "stacked per-layer LSTM weights need padded enc_size == lstm_size"
    keys = iter(jax.random.split(key, 32))
    p = {}

    # embedding stored (V, 1, Ep) so the shift kernel gathers exactly one row per step
    emb = jax.random.normal(next(keys), (vocab_size, enc_size), jnp.float32)
    p["embed"] = jnp.zeros((vocab_size, 1, Ep), jnp.float32).at[:, 0, :enc_size].set(emb)

    p["h0"] = jnp.zeros((lstm_layers, 1, Hp), jnp.float32)
    p["c0"] = jnp.zeros((lstm_layers, 1, Hp), jnp.float32)

    # fused, gate-padded LSTM weights: (L, Ep+Hp, 4*Hp) and (L, 1, 4*Hp)
    H = lstm_size
    w_all, b_all = [], []
    for l in range(lstm_layers):
        in_size = enc_size if l == 0 else lstm_size
        wih = _uniform(next(keys), (in_size, 4 * H), H)
        whh = _uniform(next(keys), (H, 4 * H), H)
        bih = _uniform(next(keys), (4 * H,), H)
        bhh = _uniform(next(keys), (4 * H,), H)
        w = jnp.zeros((Ep + Hp, 4 * Hp), jnp.float32)
        b = jnp.zeros((1, 4 * Hp), jnp.float32)
        for g in range(4):
            w = w.at[:in_size, g * Hp:g * Hp + H].set(wih[:, g * H:(g + 1) * H])
            w = w.at[Ep:Ep + H, g * Hp:g * Hp + H].set(whh[:, g * H:(g + 1) * H])
            b = b.at[0, g * Hp:g * Hp + H].set(bih[g * H:(g + 1) * H] + bhh[g * H:(g + 1) * H])
        w_all.append(w)
        b_all.append(b)
    p["lstm_w"] = jnp.stack(w_all, 0)
    p["lstm_b"] = jnp.stack(b_all, 0)

    # act scorer padded lane-dense: (Hp, 128) with 2 valid output columns
    aw = _uniform(next(keys), (H, 2), H)
    ab = _uniform(next(keys), (2,), H)
    p["act_w"] = jnp.zeros((Hp, LANE), jnp.float32).at[:H, :2].set(aw)
    p["act_b"] = jnp.zeros((1, LANE), jnp.float32).at[0, :2].set(ab)

    # reduce = Linear(2E, E) + ResLayer(E); block-structured zero padding so the
    # lane-padded concat [enc_r | enc_l] multiplies the right weight rows.
    E = enc_size
    w1 = _uniform(next(keys), (2 * E, E), 2 * E)
    b1 = _uniform(next(keys), (E,), 2 * E)
    w2 = _uniform(next(keys), (E, E), E)
    b2 = _uniform(next(keys), (E,), E)
    p["red_w1"] = (jnp.zeros((2 * Ep, Ep), jnp.float32)
                   .at[:E, :E].set(w1[:E])
                   .at[Ep:Ep + E, :E].set(w1[E:]))
    p["red_b1"] = jnp.zeros((1, Ep), jnp.float32).at[0, :E].set(b1)
    p["red_w2"] = jnp.zeros((Ep, Ep), jnp.float32).at[:E, :E].set(w2)
    p["red_b2"] = jnp.zeros((1, Ep), jnp.float32).at[0, :E].set(b2)
    # NOTE: the Decoder sub-module's parameters are unused by Encoder.forward.
    return p


class EncoderPallas:
    def __init__(self, **config):
        self.config = config
        self.enc_size = config.get("enc_size", 256)
        self.lstm_size = config.get("lstm_size", 256)
        self.lstm_layers = config.get("lstm_layers", 2)
        self.vocab_size = config["vocab_size"]
        self.Ep = _ceil_to(self.enc_size, LANE)
        self.Hp = _ceil_to(self.lstm_size, LANE)
        self.params = init_encoder_params(
            jax.random.PRNGKey(0), self.vocab_size, self.enc_size,
            self.lstm_size, self.lstm_layers)
        # TODO(synk): original code appends to undefined module-level globals
        # `action_record` / `action_logit_record`; kept as instance lists here.
        self.action_record = []
        self.action_logit_record = []
        # Build the two fused per-step pallas_call callables exactly once.
        self._shift_call = self._build_shift_call()
        self._reduce_call = self._build_reduce_call()

    # fused SHIFT step: embed-row gather + L-layer LSTM + act scorer (1 dispatch)
    def _build_shift_call(self):
        L, Ep, Hp = self.lstm_layers, self.Ep, self.Hp
        grid_spec = pltpu.PrefetchScalarGridSpec(
            num_scalar_prefetch=1,      # token id (SMEM) drives the embed row gather
            grid=(1,),
            in_specs=[
                pl.BlockSpec((1, 1, Ep), lambda i, tok: (tok[0], 0, 0)),       # embed row
                pl.BlockSpec((L, 1, Hp), lambda i, tok: (0, 0, 0)),            # h
                pl.BlockSpec((L, 1, Hp), lambda i, tok: (0, 0, 0)),            # c
                pl.BlockSpec((L, Ep + Hp, 4 * Hp), lambda i, tok: (0, 0, 0)),  # lstm W
                pl.BlockSpec((L, 1, 4 * Hp), lambda i, tok: (0, 0, 0)),        # lstm b
                pl.BlockSpec((Hp, LANE), lambda i, tok: (0, 0)),               # act W
                pl.BlockSpec((1, LANE), lambda i, tok: (0, 0)),                # act b
            ],
            out_specs=(
                pl.BlockSpec((1, Ep), lambda i, tok: (0, 0)),                  # shifted
                pl.BlockSpec((L, 1, Hp), lambda i, tok: (0, 0, 0)),            # new h
                pl.BlockSpec((L, 1, Hp), lambda i, tok: (0, 0, 0)),            # new c
                pl.BlockSpec((1, LANE), lambda i, tok: (0, 0)),                # next logits
                pl.BlockSpec((1, LANE), lambda i, tok: (0, 0)),                # next action
            ),
        )
        return pl.pallas_call(
            _shift_step_kernel,
            grid_spec=grid_spec,
            out_shape=(
                jax.ShapeDtypeStruct((1, Ep), jnp.float32),
                jax.ShapeDtypeStruct((L, 1, Hp), jnp.float32),
                jax.ShapeDtypeStruct((L, 1, Hp), jnp.float32),
                jax.ShapeDtypeStruct((1, LANE), jnp.float32),
                jax.ShapeDtypeStruct((1, LANE), jnp.int32),
            ),
            compiler_params=pltpu.CompilerParams(
                dimension_semantics=("arbitrary",),
                vmem_limit_bytes=32 * 1024 * 1024),   # explicit budget (safe on v7x 64MiB)
        )

    # fused REDUCE step: reduce-MLP + L-layer LSTM + act scorer (1 dispatch)
    def _build_reduce_call(self):
        L, Ep, Hp = self.lstm_layers, self.Ep, self.Hp
        vmem = pl.BlockSpec(memory_space=pltpu.MemorySpace.VMEM)
        return pl.pallas_call(
            _reduce_step_kernel,
            out_shape=(
                jax.ShapeDtypeStruct((1, Ep), jnp.float32),
                jax.ShapeDtypeStruct((L, 1, Hp), jnp.float32),
                jax.ShapeDtypeStruct((L, 1, Hp), jnp.float32),
                jax.ShapeDtypeStruct((1, LANE), jnp.float32),
                jax.ShapeDtypeStruct((1, LANE), jnp.int32),
            ),
            in_specs=[vmem] * 12,
            out_specs=(vmem,) * 5,
            compiler_params=pltpu.CompilerParams(
                vmem_limit_bytes=32 * 1024 * 1024),
        )

    def get_init_state(self):
        # Stack entries carry (h, c, act_logits, act_choice) so the hot loop never
        # recomputes the act-scorer outside the fused step kernels.
        h0, c0 = self.params["h0"], self.params["c0"]
        # One-time cold-path scoring of the initial state (plain XLA, not Pallas).
        logits = jnp.dot(h0[-1], self.params["act_w"]) + self.params["act_b"]   # (1, 128)
        act = (logits[:, 1:2] > logits[:, 0:1]).astype(jnp.int32)               # (1, 1)
        return (h0, c0, logits, act)

    def forward(self, enc_stack, state_stack, input_stack, action_stack,
                buffer, fixed_action=None):
        force = None
        if len(enc_stack) < 2:
            force = 0
        if not buffer.has_next():
            if force is None:
                force = 1
            else:
                return True
        if force is None and fixed_action is not None:
            force = fixed_action

        h_top, c_top, act_logits, act_dev = state_stack[-1]
        act_idx, act_score = decide(act_logits, act_dev, force=force)
        self.action_record.append(act_idx)
        # Padded (1, 128) row; lanes [0:2] hold the two act logits.
        self.action_logit_record.append(act_logits)

        p = self.params
        if act_idx == 0:  # SHIFT
            buffer_item = buffer.pop()
            tok = jnp.asarray([buffer_item], dtype=jnp.int32)
            shifted, new_h, new_c, nxt_logits, nxt_act = self._shift_call(
                tok, p["embed"], h_top, c_top, p["lstm_w"], p["lstm_b"],
                p["act_w"], p["act_b"])
            enc_stack.append(straight_through(act_score, shifted))
            state_stack.append((straight_through(act_score, new_h),
                                straight_through(act_score, new_c),
                                nxt_logits, nxt_act))
            input_stack.append([buffer_item])
            action_stack.append([0])
        elif act_idx == 1:  # REDUCE
            enc_r = enc_stack.pop(); state_stack.pop()
            input_r = input_stack.pop(); actions_r = action_stack.pop()
            enc_l = enc_stack.pop(); state_stack.pop()
            input_l = input_stack.pop(); actions_l = action_stack.pop()
            h_prev, c_prev = state_stack[-1][0], state_stack[-1][1]
            enc_red, new_h, new_c, nxt_logits, nxt_act = self._reduce_call(
                enc_r, enc_l, h_prev, c_prev,
                p["red_w1"], p["red_b1"], p["red_w2"], p["red_b2"],
                p["lstm_w"], p["lstm_b"], p["act_w"], p["act_b"])
            enc_stack.append(straight_through(act_score, enc_red))
            state_stack.append((straight_through(act_score, new_h),
                                straight_through(act_score, new_c),
                                nxt_logits, nxt_act))
            input_stack.append(input_l + input_r)
            actions_reduced = actions_l + actions_r
            actions_reduced.append(1)
            action_stack.append(actions_reduced)
        return False


# ---------------------------------- driver ----------------------------------

if __name__ == "__main__":
    config = dict(vocab_size=16, enc_size=32, lstm_size=32, lstm_layers=2)
    enc = EncoderPallas(**config)

    key = jax.random.PRNGKey(0)
    tokens = [int(t) for t in jax.random.randint(key, (6,), 0, config["vocab_size"])]
    buffer = Buffer(tokens)

    enc_stack, input_stack, action_stack = [], [], []
    state_stack = [enc.get_init_state()]

    done = False
    steps = 0
    while not done and steps < 64:
        done = enc.forward(enc_stack, state_stack, input_stack, action_stack, buffer)
        steps += 1

    # Block on everything produced by the Pallas kernels.
    for x in enc_stack:
        jax.block_until_ready(x)
    for h, c, lg, act in state_stack:
        jax.block_until_ready(h)
        jax.block_until_ready(c)
        jax.block_until_ready(lg)
        jax.block_until_ready(act)
    for lg in enc.action_logit_record:
        jax.block_until_ready(lg)

    assert done, "shift-reduce loop did not terminate"
    assert len(enc_stack) == 1
    print("KERNEL_OK")
</pallas_src>

<mosaic_0001>
module attributes {stable_mosaic.version = 11 : i64} {
  func.func @_shift_step_kernel(%arg0: i32, %arg1: memref<1xi32, #tpu.memory_space<smem>>, %arg2: memref<1x1x128xf32, #tpu.memory_space<vmem>>, %arg3: memref<2x1x128xf32, #tpu.memory_space<vmem>>, %arg4: memref<2x1x128xf32, #tpu.memory_space<vmem>>, %arg5: memref<2x256x512xf32, #tpu.memory_space<vmem>>, %arg6: memref<2x1x512xf32, #tpu.memory_space<vmem>>, %arg7: memref<128x128xf32, #tpu.memory_space<vmem>>, %arg8: memref<1x128xf32, #tpu.memory_space<vmem>>, %arg9: memref<1x128xf32, #tpu.memory_space<vmem>>, %arg10: memref<2x1x128xf32, #tpu.memory_space<vmem>>, %arg11: memref<2x1x128xf32, #tpu.memory_space<vmem>>, %arg12: memref<1x128xf32, #tpu.memory_space<vmem>>, %arg13: memref<1x128xi32, #tpu.memory_space<vmem>>) attributes {dimension_semantics = [#tpu.dimension_semantics<arbitrary>], iteration_bounds = array<i64: 1>, scalar_prefetch = 1 : i64, scratch_operands = 0 : i64, tpu.core_type = #tpu.core_type<tc>, window_params = [{transform_indices = @transform_0, window_bounds = array<i64: 1, 1, 128>}, {pipeline_mode = #tpu.pipeline_mode<synchronous>, transform_indices = @transform_1, window_bounds = array<i64: 2, 1, 128>}, {pipeline_mode = #tpu.pipeline_mode<synchronous>, transform_indices = @transform_2, window_bounds = array<i64: 2, 1, 128>}, {pipeline_mode = #tpu.pipeline_mode<synchronous>, transform_indices = @transform_3, window_bounds = array<i64: 2, 256, 512>}, {pipeline_mode = #tpu.pipeline_mode<synchronous>, transform_indices = @transform_4, window_bounds = array<i64: 2, 1, 512>}, {pipeline_mode = #tpu.pipeline_mode<synchronous>, transform_indices = @transform_5, window_bounds = array<i64: 128, 128>}, {pipeline_mode = #tpu.pipeline_mode<synchronous>, transform_indices = @transform_6, window_bounds = array<i64: 1, 128>}, {pipeline_mode = #tpu.pipeline_mode<synchronous>, transform_indices = @transform_7, window_bounds = array<i64: 1, 128>}, {pipeline_mode = #tpu.pipeline_mode<synchronous>, transform_indices = @transform_8, window_bounds = array<i64: 2, 1, 128>}, {pipeline_mode = #tpu.pipeline_mode<synchronous>, transform_indices = @transform_9, window_bounds = array<i64: 2, 1, 128>}, {pipeline_mode = #tpu.pipeline_mode<synchronous>, transform_indices = @transform_10, window_bounds = array<i64: 1, 128>}, {pipeline_mode = #tpu.pipeline_mode<synchronous>, transform_indices = @transform_11, window_bounds = array<i64: 1, 128>}]} {
    %c0 = arith.constant 0 : index
    %c0_0 = arith.constant 0 : index
    %c0_1 = arith.constant 0 : index
    %0 = vector.load %arg2[%c0, %c0_0, %c0_1] : memref<1x1x128xf32, #tpu.memory_space<vmem>>, vector<1x1x128xf32>
    %1 = vector.shape_cast %0 : vector<1x1x128xf32> to vector<1x128xf32>
    %c0_2 = arith.constant 0 : index
    %c0_3 = arith.constant 0 : index
    %2 = vector.load %arg9[%c0_2, %c0_3] : memref<1x128xf32, #tpu.memory_space<vmem>>, vector<1x128xf32>
    tpu.vector_store %arg9[%c0_2, %c0_3], %1 {strides = array<i32>} : memref<1x128xf32, #tpu.memory_space<vmem>>, vector<1x128xf32>,
    %c0_4 = arith.constant 0 : index
    %c0_5 = arith.constant 0 : index
    %c0_6 = arith.constant 0 : index
    %3 = vector.load %arg3[%c0_4, %c0_5, %c0_6] : memref<2x1x128xf32, #tpu.memory_space<vmem>>, vector<1x1x128xf32>
    %4 = vector.shape_cast %3 : vector<1x1x128xf32> to vector<1x128xf32>
    %5 = tpu.concatenate %1, %4 in 1 : vector<1x128xf32>, vector<1x128xf32> -> vector<1x256xf32>
    %c0_7 = arith.constant 0 : index
    %c0_8 = arith.constant 0 : index
    %c0_9 = arith.constant 0 : index
    %6 = vector.load %arg5[%c0_7, %c0_8, %c0_9] : memref<2x256x512xf32, #tpu.memory_space<vmem>>, vector<1x256x512xf32>
    %7 = vector.shape_cast %6 : vector<1x256x512xf32> to vector<256x512xf32>
    %cst = arith.constant dense<0.000000e+00> : vector<1x512xf32>
    %8 = tpu.matmul %5, %7, %cst {dimension_numbers = #tpu.dot_dimension_numbers<[1], [0], [0], [1], [0, 0, 1, 1], [], []>} : vector<1x256xf32>, vector<256x512xf32>, vector<1x512xf32> -> vector<1x512xf32>
    %c0_10 = arith.constant 0 : index
    %c0_11 = arith.constant 0 : index
    %c0_12 = arith.constant 0 : index
    %9 = vector.load %arg6[%c0_10, %c0_11, %c0_12] : memref<2x1x512xf32, #tpu.memory_space<vmem>>, vector<1x1x512xf32>
    %10 = vector.shape_cast %9 : vector<1x1x512xf32> to vector<1x512xf32>
    %11 = arith.addf %8, %10 : vector<1x512xf32>
    %12 = vector.extract_strided_slice %11 {offsets = [0, 0], sizes = [1, 128], strides = [1, 1]} : vector<1x512xf32> to vector<1x128xf32>
    %13 = arith.negf %12 : vector<1x128xf32>
    %14 = math.exp %13 : vector<1x128xf32>
    %cst_13 = arith.constant 1.000000e+00 : f32
    %15 = vector.broadcast %cst_13 : f32 to vector<1x128xf32>
    %16 = arith.addf %15, %14 : vector<1x128xf32>
    %17 = arith.divf %15, %16 : vector<1x128xf32>
    %18 = vector.extract_strided_slice %11 {offsets = [0, 128], sizes = [1, 128], strides = [1, 1]} : vector<1x512xf32> to vector<1x128xf32>
    %19 = arith.negf %18 : vector<1x128xf32>
    %20 = math.exp %19 : vector<1x128xf32>
    %cst_14 = arith.constant 1.000000e+00 : f32
    %21 = vector.broadcast %cst_14 : f32 to vector<1x128xf32>
    %22 = arith.addf %21, %20 : vector<1x128xf32>
    %23 = arith.divf %21, %22 : vector<1x128xf32>
    %24 = vector.extract_strided_slice %11 {offsets = [0, 256], sizes = [1, 128], strides = [1, 1]} : vector<1x512xf32> to vector<1x128xf32>
    %25 = math.tanh %24 : vector<1x128xf32>
    %26 = vector.extract_strided_slice %11 {offsets = [0, 384], sizes = [1, 128], strides = [1, 1]} : vector<1x512xf32> to vector<1x128xf32>
    %27 = arith.negf %26 : vector<1x128xf32>
    %28 = math.exp %27 : vector<1x128xf32>
    %cst_15 = arith.constant 1.000000e+00 : f32
    %29 = vector.broadcast %cst_15 : f32 to vector<1x128xf32>
    %30 = arith.addf %29, %28 : vector<1x128xf32>
    %31 = arith.divf %29, %30 : vector<1x128xf32>
    %c0_16 = arith.constant 0 : index
    %c0_17 = arith.constant 0 : index
    %c0_18 = arith.constant 0 : index
    %32 = vector.load %arg4[%c0_16, %c0_17, %c0_18] : memref<2x1x128xf32, #tpu.memory_space<vmem>>, vector<1x1x128xf32>
    %33 = vector.shape_cast %32 : vector<1x1x128xf32> to vector<1x128xf32>
    %34 = arith.mulf %23, %33 : vector<1x128xf32>
    %35 = arith.mulf %17, %25 : vector<1x128xf32>
    %36 = arith.addf %34, %35 : vector<1x128xf32>
    %37 = math.tanh %36 : vector<1x128xf32>
    %38 = arith.mulf %31, %37 : vector<1x128xf32>
    %c0_19 = arith.constant 0 : index
    %c0_20 = arith.constant 0 : index
    %c0_21 = arith.constant 0 : index
    %39 = vector.load %arg10[%c0_19, %c0_20, %c0_21] : memref<2x1x128xf32, #tpu.memory_space<vmem>>, vector<1x1x128xf32>
    %40 = vector.shape_cast %39 : vector<1x1x128xf32> to vector<1x128xf32>
    %41 = vector.shape_cast %38 : vector<1x128xf32> to vector<1x1x128xf32>
    tpu.vector_store %arg10[%c0_19, %c0_20, %c0_21], %41 {strides = array<i32>} : memref<2x1x128xf32, #tpu.memory_space<vmem>>, vector<1x1x128xf32>,
    %c0_22 = arith.constant 0 : index
    %c0_23 = arith.constant 0 : index
    %c0_24 = arith.constant 0 : index
    %42 = vector.load %arg11[%c0_22, %c0_23, %c0_24] : memref<2x1x128xf32, #tpu.memory_space<vmem>>, vector<1x1x128xf32>
    %43 = vector.shape_cast %42 : vector<1x1x128xf32> to vector<1x128xf32>
    %44 = vector.shape_cast %36 : vector<1x128xf32> to vector<1x1x128xf32>
    tpu.vector_store %arg11[%c0_22, %c0_23, %c0_24], %44 {strides = array<i32>} : memref<2x1x128xf32, #tpu.memory_space<vmem>>, vector<1x1x128xf32>,
    %c1 = arith.constant 1 : index
    %c0_25 = arith.constant 0 : index
    %c0_26 = arith.constant 0 : index
    %45 = vector.load %arg3[%c1, %c0_25, %c0_26] : memref<2x1x128xf32, #tpu.memory_space<vmem>>, vector<1x1x128xf32>
    %46 = vector.shape_cast %45 : vector<1x1x128xf32> to vector<1x128xf32>
    %47 = tpu.concatenate %38, %46 in 1 : vector<1x128xf32>, vector<1x128xf32> -> vector<1x256xf32>
    %c1_27 = arith.constant 1 : index
    %c0_28 = arith.constant 0 : index
    %c0_29 = arith.constant 0 : index
    %48 = vector.load %arg5[%c1_27, %c0_28, %c0_29] : memref<2x256x512xf32, #tpu.memory_space<vmem>>, vector<1x256x512xf32>
    %49 = vector.shape_cast %48 : vector<1x256x512xf32> to vector<256x512xf32>
    %cst_30 = arith.constant dense<0.000000e+00> : vector<1x512xf32>
    %50 = tpu.matmul %47, %49, %cst_30 {dimension_numbers = #tpu.dot_dimension_numbers<[1], [0], [0], [1], [0, 0, 1, 1], [], []>} : vector<1x256xf32>, vector<256x512xf32>, vector<1x512xf32> -> vector<1x512xf32>
    %c1_31 = arith.constant 1 : index
    %c0_32 = arith.constant 0 : index
    %c0_33 = arith.constant 0 : index
    %51 = vector.load %arg6[%c1_31, %c0_32, %c0_33] : memref<2x1x512xf32, #tpu.memory_space<vmem>>, vector<1x1x512xf32>
    %52 = vector.shape_cast %51 : vector<1x1x512xf32> to vector<1x512xf32>
    %53 = arith.addf %50, %52 : vector<1x512xf32>
    %54 = vector.extract_strided_slice %53 {offsets = [0, 0], sizes = [1, 128], strides = [1, 1]} : vector<1x512xf32> to vector<1x128xf32>
    %55 = arith.negf %54 : vector<1x128xf32>
    %56 = math.exp %55 : vector<1x128xf32>
    %cst_34 = arith.constant 1.000000e+00 : f32
    %57 = vector.broadcast %cst_34 : f32 to vector<1x128xf32>
    %58 = arith.addf %57, %56 : vector<1x128xf32>
    %59 = arith.divf %57, %58 : vector<1x128xf32>
    %60 = vector.extract_strided_slice %53 {offsets = [0, 128], sizes = [1, 128], strides = [1, 1]} : vector<1x512xf32> to vector<1x128xf32>
    %61 = arith.negf %60 : vector<1x128xf32>
    %62 = math.exp %61 : vector<1x128xf32>
    %cst_35 = arith.constant 1.000000e+00 : f32
    %63 = vector.broadcast %cst_35 : f32 to vector<1x128xf32>
    %64 = arith.addf %63, %62 : vector<1x128xf32>
    %65 = arith.divf %63, %64 : vector<1x128xf32>
    %66 = vector.extract_strided_slice %53 {offsets = [0, 256], sizes = [1, 128], strides = [1, 1]} : vector<1x512xf32> to vector<1x128xf32>
    %67 = math.tanh %66 : vector<1x128xf32>
    %68 = vector.extract_strided_slice %53 {offsets = [0, 384], sizes = [1, 128], strides = [1, 1]} : vector<1x512xf32> to vector<1x128xf32>
    %69 = arith.negf %68 : vector<1x128xf32>
    %70 = math.exp %69 : vector<1x128xf32>
    %cst_36 = arith.constant 1.000000e+00 : f32
    %71 = vector.broadcast %cst_36 : f32 to vector<1x128xf32>
    %72 = arith.addf %71, %70 : vector<1x128xf32>
    %73 = arith.divf %71, %72 : vector<1x128xf32>
    %c1_37 = arith.constant 1 : index
    %c0_38 = arith.constant 0 : index
    %c0_39 = arith.constant 0 : index
    %74 = vector.load %arg4[%c1_37, %c0_38, %c0_39] : memref<2x1x128xf32, #tpu.memory_space<vmem>>, vector<1x1x128xf32>
    %75 = vector.shape_cast %74 : vector<1x1x128xf32> to vector<1x128xf32>
    %76 = arith.mulf %65, %75 : vector<1x128xf32>
    %77 = arith.mulf %59, %67 : vector<1x128xf32>
    %78 = arith.addf %76, %77 : vector<1x128xf32>
    %79 = math.tanh %78 : vector<1x128xf32>
    %80 = arith.mulf %73, %79 : vector<1x128xf32>
    %c1_40 = arith.constant 1 : index
    %c0_41 = arith.constant 0 : index
    %c0_42 = arith.constant 0 : index
    %81 = vector.load %arg10[%c1_40, %c0_41, %c0_42] : memref<2x1x128xf32, #tpu.memory_space<vmem>>, vector<1x1x128xf32>
    %82 = vector.shape_cast %81 : vector<1x1x128xf32> to vector<1x128xf32>
    %83 = vector.shape_cast %80 : vector<1x128xf32> to vector<1x1x128xf32>
    tpu.vector_store %arg10[%c1_40, %c0_41, %c0_42], %83 {strides = array<i32>} : memref<2x1x128xf32, #tpu.memory_space<vmem>>, vector<1x1x128xf32>,
    %c1_43 = arith.constant 1 : index
    %c0_44 = arith.constant 0 : index
    %c0_45 = arith.constant 0 : index
    %84 = vector.load %arg11[%c1_43, %c0_44, %c0_45] : memref<2x1x128xf32, #tpu.memory_space<vmem>>, vector<1x1x128xf32>
    %85 = vector.shape_cast %84 : vector<1x1x128xf32> to vector<1x128xf32>
    %86 = vector.shape_cast %78 : vector<1x128xf32> to vector<1x1x128xf32>
    tpu.vector_store %arg11[%c1_43, %c0_44, %c0_45], %86 {strides = array<i32>} : memref<2x1x128xf32, #tpu.memory_space<vmem>>, vector<1x1x128xf32>,
    %c0_46 = arith.constant 0 : index
    %c0_47 = arith.constant 0 : index
    %87 = vector.load %arg7[%c0_46, %c0_47] : memref<128x128xf32, #tpu.memory_space<vmem>>, vector<128x128xf32>
    %cst_48 = arith.constant dense<0.000000e+00> : vector<1x128xf32>
    %88 = tpu.matmul %80, %87, %cst_48 {dimension_numbers = #tpu.dot_dimension_numbers<[1], [0], [0], [1], [0, 0, 1, 1], [], []>} : vector<1x128xf32>, vector<128x128xf32>, vector<1x128xf32> -> vector<1x128xf32>
    %c0_49 = arith.constant 0 : index
    %c0_50 = arith.constant 0 : index
    %89 = vector.load %arg8[%c0_49, %c0_50] : memref<1x128xf32, #tpu.memory_space<vmem>>, vector<1x128xf32>
    %90 = arith.addf %88, %89 : vector<1x128xf32>
    %c0_51 = arith.constant 0 : index
    %c0_52 = arith.constant 0 : index
    %91 = vector.load %arg12[%c0_51, %c0_52] : memref<1x128xf32, #tpu.memory_space<vmem>>, vector<1x128xf32>
    tpu.vector_store %arg12[%c0_51, %c0_52], %90 {strides = array<i32>} : memref<1x128xf32, #tpu.memory_space<vmem>>, vector<1x128xf32>,
    %92 = tpu.iota {dimensions = array<i32: 1>} : vector<1x128xi32>
    %c0_i32 = arith.constant 0 : i32
    %93 = vector.broadcast %c0_i32 : i32 to vector<1x128xi32>
    %94 = arith.cmpi eq, %92, %93 : vector<1x128xi32>
    %cst_53 = arith.constant 0.000000e+00 : f32
    %95 = vector.broadcast %cst_53 : f32 to vector<1x128xf32>
    %96 = arith.select %94, %90, %95 : vector<1x128xi1>, vector<1x128xf32>
    %cst_54 = arith.constant dense<0.000000e+00> : vector<1xf32>
    %97 = vector.multi_reduction <add>, %96, %cst_54 [1] : vector<1x128xf32> to vector<1xf32>
    %98 = vector.shape_cast %97 : vector<1xf32> to vector<1x1xf32>
    %c1_i32 = arith.constant 1 : i32
    %99 = vector.broadcast %c1_i32 : i32 to vector<1x128xi32>
    %100 = arith.cmpi eq, %92, %99 : vector<1x128xi32>
    %cst_55 = arith.constant 0.000000e+00 : f32
    %101 = vector.broadcast %cst_55 : f32 to vector<1x128xf32>
    %102 = arith.select %100, %90, %101 : vector<1x128xi1>, vector<1x128xf32>
    %cst_56 = arith.constant dense<0.000000e+00> : vector<1xf32>
    %103 = vector.multi_reduction <add>, %102, %cst_56 [1] : vector<1x128xf32> to vector<1xf32>
    %104 = vector.shape_cast %103 : vector<1xf32> to vector<1x1xf32>
    %105 = arith.cmpf ogt, %104, %98 : vector<1x1xf32>
    %106 = arith.extui %105 : vector<1x1xi1> to vector<1x1xi32>
    %107 = vector.shape_cast %106 : vector<1x1xi32> to vector<1x1xi32>
    %108 = vector.broadcast %107 : vector<1x1xi32> to vector<1x128xi32>
    %c0_57 = arith.constant 0 : index
    %c0_58 = arith.constant 0 : index
    %109 = vector.load %arg13[%c0_57, %c0_58] : memref<1x128xi32, #tpu.memory_space<vmem>>, vector<1x128xi32>
    tpu.vector_store %arg13[%c0_57, %c0_58], %108 {strides = array<i32>} : memref<1x128xi32, #tpu.memory_space<vmem>>, vector<1x128xi32>,
    return
  }
  func.func @transform_0(%arg0: i32, %arg1: memref<1xi32, #tpu.memory_space<smem>>) -> (i32, i32, i32) {
    %c0 = arith.constant 0 : index
    %0 = memref.load %arg1[%c0] : memref<1xi32, #tpu.memory_space<smem>>
    %c0_i32 = arith.constant 0 : i32
    %c0_i32_0 = arith.constant 0 : i32
    %c0_i32_1 = arith.constant 0 : i32
    return %0, %c0_i32, %c0_i32_0 : i32, i32, i32
  }
  func.func @transform_1(%arg0: i32, %arg1: memref<1xi32, #tpu.memory_space<smem>>) -> (i32, i32, i32) {
    %c0_i32 = arith.constant 0 : i32
    %c0_i32_0 = arith.constant 0 : i32
    %c0_i32_1 = arith.constant 0 : i32
    %c0_i32_2 = arith.constant 0 : i32
    return %c0_i32, %c0_i32_0, %c0_i32_1 : i32, i32, i32
  }
  func.func @transform_2(%arg0: i32, %arg1: memref<1xi32, #tpu.memory_space<smem>>) -> (i32, i32, i32) {
    %c0_i32 = arith.constant 0 : i32
    %c0_i32_0 = arith.constant 0 : i32
    %c0_i32_1 = arith.constant 0 : i32
    %c0_i32_2 = arith.constant 0 : i32
    return %c0_i32, %c0_i32_0, %c0_i32_1 : i32, i32, i32
  }
  func.func @transform_3(%arg0: i32, %arg1: memref<1xi32, #tpu.memory_space<smem>>) -> (i32, i32, i32) {
    %c0_i32 = arith.constant 0 : i32
    %c0_i32_0 = arith.constant 0 : i32
    %c0_i32_1 = arith.constant 0 : i32
    %c0_i32_2 = arith.constant 0 : i32
    return %c0_i32, %c0_i32_0, %c0_i32_1 : i32, i32, i32
  }
  func.func @transform_4(%arg0: i32, %arg1: memref<1xi32, #tpu.memory_space<smem>>) -> (i32, i32, i32) {
    %c0_i32 = arith.constant 0 : i32
    %c0_i32_0 = arith.constant 0 : i32
    %c0_i32_1 = arith.constant 0 : i32
    %c0_i32_2 = arith.constant 0 : i32
    return %c0_i32, %c0_i32_0, %c0_i32_1 : i32, i32, i32
  }
  func.func @transform_5(%arg0: i32, %arg1: memref<1xi32, #tpu.memory_space<smem>>) -> (i32, i32) {
    %c0_i32 = arith.constant 0 : i32
    %c0_i32_0 = arith.constant 0 : i32
    %c0_i32_1 = arith.constant 0 : i32
    return %c0_i32, %c0_i32_0 : i32, i32
  }
  func.func @transform_6(%arg0: i32, %arg1: memref<1xi32, #tpu.memory_space<smem>>) -> (i32, i32) {
    %c0_i32 = arith.constant 0 : i32
    %c0_i32_0 = arith.constant 0 : i32
    %c0_i32_1 = arith.constant 0 : i32
    return %c0_i32, %c0_i32_0 : i32, i32
  }
  func.func @transform_7(%arg0: i32, %arg1: memref<1xi32, #tpu.memory_space<smem>>) -> (i32, i32) {
    %c0_i32 = arith.constant 0 : i32
    %c0_i32_0 = arith.constant 0 : i32
    %c0_i32_1 = arith.constant 0 : i32
    return %c0_i32, %c0_i32_0 : i32, i32
  }
  func.func @transform_8(%arg0: i32, %arg1: memref<1xi32, #tpu.memory_space<smem>>) -> (i32, i32, i32) {
    %c0_i32 = arith.constant 0 : i32
    %c0_i32_0 = arith.constant 0 : i32
    %c0_i32_1 = arith.constant 0 : i32
    %c0_i32_2 = arith.constant 0 : i32
    return %c0_i32, %c0_i32_0, %c0_i32_1 : i32, i32, i32
  }
  func.func @transform_9(%arg0: i32, %arg1: memref<1xi32, #tpu.memory_space<smem>>) -> (i32, i32, i32) {
    %c0_i32 = arith.constant 0 : i32
    %c0_i32_0 = arith.constant 0 : i32
    %c0_i32_1 = arith.constant 0 : i32
    %c0_i32_2 = arith.constant 0 : i32
    return %c0_i32, %c0_i32_0, %c0_i32_1 : i32, i32, i32
  }
  func.func @transform_10(%arg0: i32, %arg1: memref<1xi32, #tpu.memory_space<smem>>) -> (i32, i32) {
    %c0_i32 = arith.constant 0 : i32
    %c0_i32_0 = arith.constant 0 : i32
    %c0_i32_1 = arith.constant 0 : i32
    return %c0_i32, %c0_i32_0 : i32, i32
  }
  func.func @transform_11(%arg0: i32, %arg1: memref<1xi32, #tpu.memory_space<smem>>) -> (i32, i32) {
    %c0_i32 = arith.constant 0 : i32
    %c0_i32_0 = arith.constant 0 : i32
    %c0_i32_1 = arith.constant 0 : i32
    return %c0_i32, %c0_i32_0 : i32, i32
  }
}

</mosaic_0001>

<bundles_post_ra>
// kernel: tpu_custom_call.1
= control target key start
LH: loop header
LB: loop body
LE: loop exit
PB: predicated region body
PF: predicated region fallthrough
CT: control target
= control target key end

     0   :  { %19 = vsyncpa [#allocation5], 0  ;;  %s1737_s0 = inlined_call_operand.<no memory space> [shape: s32[1], index: 0, kind: input, shape index: {}]   ;;  %s1738_s1 = inlined_call_operand.hbm [shape: f32[16,1,128], index: 1, kind: input, shape index: {}]   ;;  %s1739_s2 = inlined_call_operand.vmem [shape: f32[2,1,128], index: 2, kind: input, shape index: {}]   ;;  %s1740_s3 = inlined_call_operand.vmem [shape: f32[2,1,128], index: 3, kind: input, shape index: {}]   ;;  %s1741_s4 = inlined_call_operand.hbm [shape: f32[2,256,512], index: 4, kind: input, shape index: {}]   ;;  %s1742_s5 = inlined_call_operand.vmem [shape: f32[2,1,512], index: 5, kind: input, shape index: {}]   ;;  %s1743_s6 = inlined_call_operand.hbm [shape: f32[128,128], index: 6, kind: input, shape index: {}]   ;;  %s1744_s7 = inlined_call_operand.vmem [shape: f32[1,128], index: 7, kind: input, shape index: {}]   ;;  %s1745_s8 = inlined_call_operand.hbm [shape: f32[1,128], index: 8, kind: output, shape index: {0}]   ;;  %s1746_s9 = inlined_call_operand.hbm [shape: f32[2,1,128], index: 9, kind: output, shape index: {1}]   ;;  %s1747_s10 = inlined_call_operand.hbm [shape: f32[2,1,128], index: 10, kind: output, shape index: {2}]   ;;  %s1748_s11 = inlined_call_operand.hbm [shape: f32[1,128], index: 11, kind: output, shape index: {3}]   ;;  %s1749_s12 = inlined_call_operand.hbm [shape: s32[1,128], index: 12, kind: output, shape index: {4}]  }
   0x1   :  { %20 = vsyncpa [#allocation8], 0 }
   0x2   :  { %21 = vsyncpa [#allocation6], 0 }
   0x3   :  { %22 = vsyncpa [#allocation12], 0 }
   0x4   :  { %23 = vsyncpa [#allocation15], 0  ;;  %s1487_s21 = smov [#allocation7]   ;;  %s907_s25 = sshll.u32 %s1737_s0, 4 }
   0x5   :  { %s46_s22 = sshll.u32 %s1487_s21, 4  ;;  %s1299_s28 = scalar_lea.hbm %s1741_s4, 32768  ;;  %s47_s22 = int_to_ptr.vmem [resolvable:$true] %s46_s22 }
   0x6   :  { %p1300_p0 = scmp.ne.s32.totalorder %s1741_s4, %s1299_s28  ;;  %p1303_p1 = scmp.lt.u32.totalorder %s1299_s28, %s1741_s4 }
   0x8   :  { %p1305_p2 = pnand %p1303_p1, %p1300_p0 }
   0xa   :  { %1308 = shalt.err (!%p1305_p2)
}
   0xb   :  { %s1309_s15 = scalar_lea.vmem %s47_s22, 32768  ;;  %p1314_p4 = scmp.lt.s32.totalorder %s47_s22, %s47_s22 }
   0xc   :  { %p1310_p3 = scmp.ne.s32.totalorder %s47_s22, %s1309_s15  ;;  %p1315_p5 = scmp.lt.s32.totalorder %s1309_s15, %s1309_s15 }
   0xe   :  { %p1316_p6 = por %p1315_p5, %p1314_p4 }
  0x10   :  { %p1317_p7 = pnand %p1316_p6, %p1310_p3 }
  0x12   :  { %1320 = shalt.err (!%p1317_p7)
}
  0x13   :  { %s1488_s0 = smov 512   ;;  %s1489_s16 = smov 32  }
  0x14   :  { %52 = dma.hbm_to_vmem [thread:$0]  %s1741_s4, 32768, %s47_s22, [#allocation8], %s1488_s0, %s1488_s0, %s1489_s16  }
  0x15   :  { %s31_s21 = scalar_lea.hbm %s1738_s1, %s907_s25  ;;  %s1490_s23 = smov [#allocation4]  }
  0x16   :  { %s33_s24 = sshll.u32 %s1490_s23, 4  ;;  %s1491_s26 = smov [#allocation9]   ;;  %s34_s24 = int_to_ptr.vmem [resolvable:$true] %s33_s24 }
  0x17   :  { %s60_s27 = sshll.u32 %s1491_s26, 4  ;;  %s1321_s28 = scalar_lea.hbm %s31_s21, 16  ;;  %s61_s27 = int_to_ptr.vmem [resolvable:$true] %s60_s27 }
  0x18   :  { %p1322_p8 = scmp.ne.s32.totalorder %s31_s21, %s1321_s28  ;;  %s1323_s13 = scalar_lea.hbm %s1738_s1, 256 }
  0x19   :  { %p1324_p9 = scmp.lt.u32.totalorder %s31_s21, %s1738_s1  ;;  %p1325_p10 = scmp.lt.u32.totalorder %s1323_s13, %s1321_s28 }
  0x1a   :  { %p1327_p12 = scmp.lt.u32.totalorder %s1321_s28, %s31_s21 }
  0x1b   :  { %p1326_p11 = por %p1325_p10, %p1324_p9 }
  0x1d   :  { %p1328_p13 = por %p1327_p12, %p1326_p11 }
  0x1f   :  { %p1329_p0 = pnand %p1328_p13, %p1322_p8 }
  0x21   :  { %1332 = shalt.err (!%p1329_p0)
}
  0x22   :  { %s1333_s4 = scalar_lea.vmem %s34_s24, 16  ;;  %s1337_s22 = scalar_lea.vmem %s34_s24, 32 }
  0x23   :  { %p1334_p1 = scmp.ne.s32.totalorder %s34_s24, %s1333_s4  ;;  %p1338_p2 = scmp.lt.s32.totalorder %s34_s24, %s34_s24 }
  0x24   :  { %p1339_p3 = scmp.lt.s32.totalorder %s1337_s22, %s1333_s4 }
  0x26   :  { %p1340_p4 = por %p1339_p3, %p1338_p2 }
  0x28   :  { %p1341_p5 = pnand %p1340_p4, %p1334_p1 }
  0x2a   :  { %1344 = shalt.err (!%p1341_p5)
}
  0x2b   :  { %36 = dma.hbm_to_vmem [thread:$0]  %s31_s21, 16, %s34_s24, [#allocation5]  }
  0x2c   :  { %s1345_s1 = scalar_lea.hbm %s1743_s6, 2048 }
  0x2d   :  { %p1346_p6 = scmp.ne.s32.totalorder %s1743_s6, %s1345_s1  ;;  %p1349_p7 = scmp.lt.u32.totalorder %s1345_s1, %s1743_s6 }
  0x2f   :  { %p1351_p8 = pnand %p1349_p7, %p1346_p6 }
  0x31   :  { %1354 = shalt.err (!%p1351_p8)
}
  0x32   :  { %s1355_s20 = scalar_lea.vmem %s61_s27, 2048  ;;  %p1360_p10 = scmp.lt.s32.totalorder %s61_s27, %s61_s27 }
  0x33   :  { %p1356_p9 = scmp.ne.s32.totalorder %s61_s27, %s1355_s20  ;;  %p1361_p11 = scmp.lt.s32.totalorder %s1355_s20, %s1355_s20 }
  0x35   :  { %p1362_p12 = por %p1361_p11, %p1360_p10 }
  0x37   :  { %p1363_p13 = pnand %p1362_p12, %p1356_p9 }
  0x39   :  { %1366 = shalt.err (!%p1363_p13)
}
  0x3a   :  { %s1492_s21 = smov 128   ;;  %s1493_s23 = smov 8  }
  0x3b   :  { %66 = dma.hbm_to_vmem [thread:$0]  %s1743_s6, 2048, %s61_s27, [#allocation8], %s1492_s21, %s1492_s21, %s1493_s23  }
  0x3c   :  { %1477 = dma.done.wait [#allocation5], 16  }
  0x3d   :  { %1478 = vsyncadd [#allocation5], 4294967280 }
  0x3e   :  { %1479 = dma.done.wait [#allocation8], 34816  }
  0x3f   :  { %1480 = vsyncadd [#allocation8], 4294932480  ;;  %v83_v0 = vld [vmem:[#allocation7 + $0x8] sm:$0xff]  ;;  %v82_v2 = vld [vmem:[#allocation7] sm:$0xff]  ;;  %vm1495_vm0 = vmmov 0   ;;  %vm819_vm2 = vcmask 1040384  }
  0x40   :  { %v87_v1 = vld [vmem:[#allocation7 + $0x28] sm:$0xff]  ;;  %v86_v4 = vld [vmem:[#allocation7 + $0x20] sm:$0xff]  ;;  %v85_v18 = vld [vmem:[#allocation7 + $0x18] sm:$0xff]  ;;  %s1498_s16 = smov [#allocation14]  }
  0x41   :  { %v969_v3 = vpack.c.bf16 %v87_v1, %v83_v0  ;;  %v91_v5 = vld [vmem:[#allocation7 + $0x48] sm:$0xff]  ;;  %v971_v7 = vpack.c.bf16 %v86_v4, %v82_v2  ;;  %v90_v9 = vld [vmem:[#allocation7 + $0x40] sm:$0xff]  ;;  %v89_v19 = vld [vmem:[#allocation7 + $0x38] sm:$0xff]  ;;  %s871_s17 = sshll.u32 %s1498_s16, 4  ;;  %s1656_s17 = int_to_ptr.vmem [resolvable:$true] %s871_s17 }
  0x42   :  { %v95_v6 = vld [vmem:[#allocation7 + $0x68] sm:$0xff]  ;;  %v94_v10 = vld [vmem:[#allocation7 + $0x60] sm:$0xff]  ;;  %v1033_v21 = vpack.c.bf16 %v89_v19, %v85_v18  ;;  %v84_v22 = vld [vmem:[#allocation7 + $0x10] sm:$0xff] }
  0x43   :  { %v973_v8 = vpack.c.bf16 %v95_v6, %v91_v5  ;;  %v99_v11 = vld [vmem:[#allocation7 + $0x88] sm:$0xff]  ;;  %970 = vmatprep.subr.bf16.mxu0 %v969_v3  ;;  %v975_v13 = vpack.c.bf16 %v94_v10, %v90_v9  ;;  %v98_v14 = vld [vmem:[#allocation7 + $0x80] sm:$0xff]  ;;  %v88_v23 = vld [vmem:[#allocation7 + $0x30] sm:$0xff] }
  0x44   :  { %v103_v12 = vld [vmem:[#allocation7 + $0xa8] sm:$0xff]  ;;  %972 = vmatpush1.bf16.msra.mxu0 %v971_v7  ;;  %v102_v15 = vld [vmem:[#allocation7 + $0xa0] sm:$0xff]  ;;  %v1035_v24 = vpack.c.bf16 %v88_v23, %v84_v22  ;;  %1034 = vmatprep.subr.bf16.mxu1 %v1033_v21  ;;  %v93_v26 = vld [vmem:[#allocation7 + $0x58] sm:$0xff] }
  0x45   :  { %974 = vmatprep.subr.bf16.mxu0 %v973_v8  ;;  %v977_v16 = vpack.c.bf16 %v103_v12, %v99_v11  ;;  %v107_v17 = vld [vmem:[#allocation7 + $0xc8] sm:$0xff]  ;;  %v979_v25 = vpack.c.bf16 %v102_v15, %v98_v14  ;;  %v97_v27 = vld [vmem:[#allocation7 + $0x78] sm:$0xff]  ;;  %v92_v28 = vld [vmem:[#allocation7 + $0x50] sm:$0xff] }
  0x46   :  { %v111_v20 = vld [vmem:[#allocation7 + $0xe8] sm:$0xff]  ;;  %v106_v30 = vld [vmem:[#allocation7 + $0xc0] sm:$0xff]  ;;  %1036 = vmatpush1.bf16.msra.mxu1 %v1035_v24  ;;  %v1037_v32 = vpack.c.bf16 %v97_v27, %v93_v26  ;;  %v96_v33 = vld [vmem:[#allocation7 + $0x70] sm:$0xff] }
  0x47   :  { %v981_v29 = vpack.c.bf16 %v111_v20, %v107_v17  ;;  %v110_v31 = vld [vmem:[#allocation7 + $0xe0] sm:$0xff]  ;;  %v115_v34 = vld [vmem:[#allocation7 + $0x108] sm:$0xff]  ;;  %v1039_v36 = vpack.c.bf16 %v96_v33, %v92_v28  ;;  %v101_v37 = vld [vmem:[#allocation7 + $0x98] sm:$0xff] }
  0x48   :  { %976 = vmatpush1.bf16.msra.mxu0 %v975_v13  ;;  %v119_v35 = vld [vmem:[#allocation7 + $0x128] sm:$0xff]  ;;  %1038 = vmatprep.subr.bf16.mxu1 %v1037_v32  ;;  %v105_v38 = vld [vmem:[#allocation7 + $0xb8] sm:$0xff]  ;;  %v100_v39 = vld [vmem:[#allocation7 + $0x90] sm:$0xff]  ;;  %v983_v41 = vpack.c.bf16 %v110_v31, %v106_v30 }
  0x49   :  { %978 = vmatprep.subr.bf16.mxu0 %v977_v16  ;;  %v104_v40 = vld [vmem:[#allocation7 + $0xb0] sm:$0xff]  ;;  %v114_v42 = vld [vmem:[#allocation7 + $0x100] sm:$0xff]  ;;  %v1041_v44 = vpack.c.bf16 %v105_v38, %v101_v37  ;;  %v985_v45 = vpack.c.bf16 %v119_v35, %v115_v34  ;;  %v123_v46 = vld [vmem:[#allocation7 + $0x148] sm:$0xff] }
  0x4a   :  { %v118_v43 = vld [vmem:[#allocation7 + $0x120] sm:$0xff]  ;;  %1040 = vmatpush1.bf16.msra.mxu1 %v1039_v36  ;;  %v1043_v47 = vpack.c.bf16 %v104_v40, %v100_v39  ;;  %v109_v48 = vld [vmem:[#allocation7 + $0xd8] sm:$0xff]  ;;  %v127_v50 = vld [vmem:[#allocation7 + $0x168] sm:$0xff] }
  0x4b   :  { %v113_v49 = vld [vmem:[#allocation7 + $0xf8] sm:$0xff]  ;;  %1042 = vmatprep.subr.bf16.mxu1 %v1041_v44  ;;  %v108_v52 = vld [vmem:[#allocation7 + $0xd0] sm:$0xff]  ;;  %v987_v54 = vpack.c.bf16 %v118_v43, %v114_v42  ;;  %v989_v57 = vpack.c.bf16 %v127_v50, %v123_v46  ;;  %v122_v58 = vld [vmem:[#allocation7 + $0x140] sm:$0xff] }
  0x4c   :  { %980 = vmatpush1.bf16.msra.mxu0 %v979_v25  ;;  %v1045_v51 = vpack.c.bf16 %v113_v49, %v109_v48  ;;  %v112_v53 = vld [vmem:[#allocation7 + $0xf0] sm:$0xff]  ;;  %v117_v55 = vld [vmem:[#allocation7 + $0x118] sm:$0xff]  ;;  %v126_v59 = vld [vmem:[#allocation7 + $0x160] sm:$0xff] }
  0x4d   :  { %982 = vmatprep.subr.bf16.mxu0 %v981_v29  ;;  %v121_v56 = vld [vmem:[#allocation7 + $0x138] sm:$0xff]  ;;  %v131_v60 = vld [vmem:[#allocation7 + $0x188] sm:$0xff]  ;;  %v1047_v61 = vpack.c.bf16 %v112_v53, %v108_v52  ;;  %v116_v0 = vld [vmem:[#allocation7 + $0x110] sm:$0xff]  ;;  %v991_v4 = vpack.c.bf16 %v126_v59, %v122_v58 }
  0x4e   :  { %1044 = vmatpush1.bf16.msra.mxu1 %v1043_v47  ;;  %v135_v62 = vld [vmem:[#allocation7 + $0x1a8] sm:$0xff]  ;;  %v1049_v63 = vpack.c.bf16 %v121_v56, %v117_v55  ;;  %v120_v1 = vld [vmem:[#allocation7 + $0x130] sm:$0xff]  ;;  %v125_v2 = vld [vmem:[#allocation7 + $0x158] sm:$0xff] }
  0x4f   :  { %1046 = vmatprep.subr.bf16.mxu1 %v1045_v51  ;;  %v129_v3 = vld [vmem:[#allocation7 + $0x178] sm:$0xff]  ;;  %v993_v5 = vpack.c.bf16 %v135_v62, %v131_v60  ;;  %v130_v6 = vld [vmem:[#allocation7 + $0x180] sm:$0xff]  ;;  %v139_v8 = vld [vmem:[#allocation7 + $0x1c8] sm:$0xff]  ;;  %v1051_v9 = vpack.c.bf16 %v120_v1, %v116_v0 }
  0x50   :  { %984 = vmatpush1.bf16.msra.mxu0 %v983_v41  ;;  %v134_v7 = vld [vmem:[#allocation7 + $0x1a0] sm:$0xff]  ;;  %v143_v10 = vld [vmem:[#allocation7 + $0x1e8] sm:$0xff]  ;;  %v1053_v11 = vpack.c.bf16 %v129_v3, %v125_v2  ;;  %v124_v12 = vld [vmem:[#allocation7 + $0x150] sm:$0xff] }
  0x51   :  { %986 = vmatprep.subr.bf16.mxu0 %v985_v45  ;;  %v128_v13 = vld [vmem:[#allocation7 + $0x170] sm:$0xff]  ;;  %v133_v14 = vld [vmem:[#allocation7 + $0x198] sm:$0xff]  ;;  %v995_v16 = vpack.c.bf16 %v134_v7, %v130_v6  ;;  %v997_v17 = vpack.c.bf16 %v143_v10, %v139_v8  ;;  %v138_v18 = vld [vmem:[#allocation7 + $0x1c0] sm:$0xff] }
  0x52   :  { %1048 = vmatpush1.bf16.msra.mxu1 %v1047_v61  ;;  %v137_v15 = vld [vmem:[#allocation7 + $0x1b8] sm:$0xff]  ;;  %v142_v19 = vld [vmem:[#allocation7 + $0x1e0] sm:$0xff]  ;;  %v147_v20 = vld [vmem:[#allocation7 + $0x208] sm:$0xff]  ;;  %v1055_v21 = vpack.c.bf16 %v128_v13, %v124_v12 }
  0x53   :  { %1050 = vmatprep.subr.bf16.mxu1 %v1049_v63  ;;  %v151_v22 = vld [vmem:[#allocation7 + $0x228] sm:$0xff]  ;;  %v1057_v23 = vpack.c.bf16 %v137_v15, %v133_v14  ;;  %v132_v24 = vld [vmem:[#allocation7 + $0x190] sm:$0xff]  ;;  %v141_v26 = vld [vmem:[#allocation7 + $0x1d8] sm:$0xff]  ;;  %v999_v28 = vpack.c.bf16 %v142_v19, %v138_v18 }
  0x54   :  { %988 = vmatpush1.bf16.msra.mxu0 %v987_v54  ;;  %v136_v25 = vld [vmem:[#allocation7 + $0x1b0] sm:$0xff]  ;;  %v145_v27 = vld [vmem:[#allocation7 + $0x1f8] sm:$0xff]  ;;  %v1001_v29 = vpack.c.bf16 %v151_v22, %v147_v20  ;;  %v146_v30 = vld [vmem:[#allocation7 + $0x200] sm:$0xff] }
  0x55   :  { %990 = vmatprep.subr.bf16.mxu0 %v989_v57  ;;  %v150_v31 = vld [vmem:[#allocation7 + $0x220] sm:$0xff]  ;;  %v155_v32 = vld [vmem:[#allocation7 + $0x248] sm:$0xff]  ;;  %v1059_v33 = vpack.c.bf16 %v136_v25, %v132_v24  ;;  %v1061_v35 = vpack.c.bf16 %v145_v27, %v141_v26  ;;  %v140_v36 = vld [vmem:[#allocation7 + $0x1d0] sm:$0xff] }
  0x56   :  { %1052 = vmatpush1.bf16.msra.mxu1 %v1051_v9  ;;  %v159_v34 = vld [vmem:[#allocation7 + $0x268] sm:$0xff]  ;;  %v144_v37 = vld [vmem:[#allocation7 + $0x1f0] sm:$0xff]  ;;  %v149_v38 = vld [vmem:[#allocation7 + $0x218] sm:$0xff]  ;;  %v1003_v40 = vpack.c.bf16 %v150_v31, %v146_v30 }
  0x57   :  { %1054 = vmatprep.subr.bf16.mxu1 %v1053_v11  ;;  %v153_v39 = vld [vmem:[#allocation7 + $0x238] sm:$0xff]  ;;  %v1005_v41 = vpack.c.bf16 %v159_v34, %v155_v32  ;;  %v154_v42 = vld [vmem:[#allocation7 + $0x240] sm:$0xff]  ;;  %v163_v44 = vld [vmem:[#allocation7 + $0x288] sm:$0xff]  ;;  %v1063_v45 = vpack.c.bf16 %v144_v37, %v140_v36 }
  0x58   :  { %992 = vmatpush1.bf16.msra.mxu0 %v991_v4  ;;  %v158_v43 = vld [vmem:[#allocation7 + $0x260] sm:$0xff]  ;;  %v167_v46 = vld [vmem:[#allocation7 + $0x2a8] sm:$0xff]  ;;  %v1065_v47 = vpack.c.bf16 %v153_v39, %v149_v38  ;;  %v148_v48 = vld [vmem:[#allocation7 + $0x210] sm:$0xff] }
  0x59   :  { %994 = vmatprep.subr.bf16.mxu0 %v993_v5  ;;  %v152_v49 = vld [vmem:[#allocation7 + $0x230] sm:$0xff]  ;;  %v157_v50 = vld [vmem:[#allocation7 + $0x258] sm:$0xff]  ;;  %v1007_v52 = vpack.c.bf16 %v158_v43, %v154_v42  ;;  %v162_v53 = vld [vmem:[#allocation7 + $0x280] sm:$0xff]  ;;  %v1009_v54 = vpack.c.bf16 %v167_v46, %v163_v44 }
  0x5a   :  { %1056 = vmatpush1.bf16.msra.mxu1 %v1055_v21  ;;  %v161_v51 = vld [vmem:[#allocation7 + $0x278] sm:$0xff]  ;;  %v166_v55 = vld [vmem:[#allocation7 + $0x2a0] sm:$0xff]  ;;  %v171_v56 = vld [vmem:[#allocation7 + $0x2c8] sm:$0xff]  ;;  %v1067_v58 = vpack.c.bf16 %v152_v49, %v148_v48 }
  0x5b   :  { %1058 = vmatprep.subr.bf16.mxu1 %v1057_v23  ;;  %v175_v57 = vld [vmem:[#allocation7 + $0x2e8] sm:$0xff]  ;;  %v1069_v59 = vpack.c.bf16 %v161_v51, %v157_v50  ;;  %v156_v60 = vld [vmem:[#allocation7 + $0x250] sm:$0xff]  ;;  %v81_v62 = vld [vmem:[%s1739_s2] sm:$0x1]  ;;  %v1011_v2 = vpack.c.bf16 %v166_v55, %v162_v53 }
  0x5c   :  { %996 = vmatpush1.bf16.msra.mxu0 %v995_v16  ;;  %v160_v61 = vld [vmem:[#allocation7 + $0x270] sm:$0xff]  ;;  %v165_v63 = vld [vmem:[#allocation7 + $0x298] sm:$0xff]  ;;  %296 = vmatprep.mubr.f32.mxu0 %v81_v62  ;;  %v1013_v3 = vpack.c.bf16 %v175_v57, %v171_v56  ;;  %v170_v4 = vld [vmem:[#allocation7 + $0x2c0] sm:$0xff] }
  0x5d   :  { %998 = vmatprep.subr.bf16.mxu0 %v997_v17  ;;  %v169_v0 = vld [vmem:[#allocation7 + $0x2b8] sm:$0xff]  ;;  %367 = vmatprep.mubr.f32.mxu1 %v81_v62  ;;  %v174_v5 = vld [vmem:[#allocation7 + $0x2e0] sm:$0xff]  ;;  %v179_v6 = vld [vmem:[#allocation7 + $0x308] sm:$0xff]  ;;  %v1071_v7 = vpack.c.bf16 %v160_v61, %v156_v60 }
  0x5e   :  { %1060 = vmatpush1.bf16.msra.mxu1 %v1059_v33  ;;  %v1609_v1 = vld [vmem:[#allocation4] sm:$0x1]  ;;  %v183_v8 = vld [vmem:[#allocation7 + $0x328] sm:$0xff]  ;;  %v1073_v9 = vpack.c.bf16 %v169_v0, %v165_v63  ;;  %v164_v10 = vld [vmem:[#allocation7 + $0x290] sm:$0xff]  ;;  %v1015_v14 = vpack.c.bf16 %v174_v5, %v170_v4 }
  0x5f   :  { %1062 = vmatprep.subr.bf16.mxu1 %v1061_v35  ;;  %80 = vst [vmem:[#allocation10] sm:$0x1] %v1609_v1  ;;  %v168_v11 = vld [vmem:[#allocation7 + $0x2b0] sm:$0xff]  ;;  %v173_v12 = vld [vmem:[#allocation7 + $0x2d8] sm:$0xff]  ;;  %v1017_v15 = vpack.c.bf16 %v183_v8, %v179_v6  ;;  %v178_v16 = vld [vmem:[#allocation7 + $0x300] sm:$0xff] }
  0x60   :  { %1000 = vmatpush1.bf16.msra.mxu0 %v999_v28  ;;  %v177_v13 = vld [vmem:[#allocation7 + $0x2f8] sm:$0xff]  ;;  %v182_v17 = vld [vmem:[#allocation7 + $0x320] sm:$0xff]  ;;  %v187_v18 = vld [vmem:[#allocation7 + $0x348] sm:$0xff]  ;;  %v1075_v19 = vpack.c.bf16 %v168_v11, %v164_v10 }
  0x61   :  { %1002 = vmatprep.subr.bf16.mxu0 %v1001_v29  ;;  %v191_v20 = vld [vmem:[#allocation7 + $0x368] sm:$0xff]  ;;  %v1077_v21 = vpack.c.bf16 %v177_v13, %v173_v12  ;;  %v172_v22 = vld [vmem:[#allocation7 + $0x2d0] sm:$0xff]  ;;  %v181_v24 = vld [vmem:[#allocation7 + $0x318] sm:$0xff]  ;;  %v1019_v26 = vpack.c.bf16 %v182_v17, %v178_v16 }
  0x62   :  { %1064 = vmatpush1.bf16.msra.mxu1 %v1063_v45  ;;  %v176_v23 = vld [vmem:[#allocation7 + $0x2f0] sm:$0xff]  ;;  %v185_v25 = vld [vmem:[#allocation7 + $0x338] sm:$0xff]  ;;  %v1021_v27 = vpack.c.bf16 %v191_v20, %v187_v18  ;;  %v186_v28 = vld [vmem:[#allocation7 + $0x340] sm:$0xff] }
  0x63   :  { %1066 = vmatprep.subr.bf16.mxu1 %v1065_v47  ;;  %v190_v29 = vld [vmem:[#allocation7 + $0x360] sm:$0xff]  ;;  %v195_v30 = vld [vmem:[#allocation7 + $0x388] sm:$0xff]  ;;  %v1079_v31 = vpack.c.bf16 %v176_v23, %v172_v22  ;;  %v1081_v33 = vpack.c.bf16 %v185_v25, %v181_v24  ;;  %v180_v34 = vld [vmem:[#allocation7 + $0x310] sm:$0xff] }
  0x64   :  { %1004 = vmatpush1.bf16.msra.mxu0 %v1003_v40  ;;  %v199_v32 = vld [vmem:[#allocation7 + $0x3a8] sm:$0xff]  ;;  %v184_v35 = vld [vmem:[#allocation7 + $0x330] sm:$0xff]  ;;  %v189_v36 = vld [vmem:[#allocation7 + $0x358] sm:$0xff]  ;;  %v1023_v38 = vpack.c.bf16 %v190_v29, %v186_v28 }
  0x65   :  { %1006 = vmatprep.subr.bf16.mxu0 %v1005_v41  ;;  %v193_v37 = vld [vmem:[#allocation7 + $0x378] sm:$0xff]  ;;  %v1025_v39 = vpack.c.bf16 %v199_v32, %v195_v30  ;;  %v194_v40 = vld [vmem:[#allocation7 + $0x380] sm:$0xff]  ;;  %v203_v42 = vld [vmem:[#allocation7 + $0x3c8] sm:$0xff]  ;;  %v1083_v43 = vpack.c.bf16 %v184_v35, %v180_v34 }
  0x66   :  { %1068 = vmatpush1.bf16.msra.mxu1 %v1067_v58  ;;  %v198_v41 = vld [vmem:[#allocation7 + $0x3a0] sm:$0xff]  ;;  %v207_v44 = vld [vmem:[#allocation7 + $0x3e8] sm:$0xff]  ;;  %v1085_v45 = vpack.c.bf16 %v193_v37, %v189_v36  ;;  %v188_v46 = vld [vmem:[#allocation7 + $0x350] sm:$0xff] }
  0x67   :  { %1070 = vmatprep.subr.bf16.mxu1 %v1069_v59  ;;  %v192_v47 = vld [vmem:[#allocation7 + $0x370] sm:$0xff]  ;;  %v197_v48 = vld [vmem:[#allocation7 + $0x398] sm:$0xff]  ;;  %v1027_v50 = vpack.c.bf16 %v198_v41, %v194_v40  ;;  %v1029_v51 = vpack.c.bf16 %v207_v44, %v203_v42  ;;  %v206_v53 = vld [vmem:[#allocation7 + $0x3e0] sm:$0xff] }
  0x68   :  { %1008 = vmatpush1.bf16.msra.mxu0 %v1007_v52  ;;  %v201_v49 = vld [vmem:[#allocation7 + $0x3b8] sm:$0xff]  ;;  %v202_v52 = vld [vmem:[#allocation7 + $0x3c0] sm:$0xff]  ;;  %v196_v55 = vld [vmem:[#allocation7 + $0x390] sm:$0xff] }
  0x69   :  { %1010 = vmatprep.subr.bf16.mxu0 %v1009_v54  ;;  %v1087_v54 = vpack.c.bf16 %v192_v47, %v188_v46  ;;  %v1089_v56 = vpack.c.bf16 %v201_v49, %v197_v48  ;;  %v200_v57 = vld [vmem:[#allocation7 + $0x3b0] sm:$0xff]  ;;  %v405_v58 = vld [vmem:[#allocation7 + $0x408] sm:$0xff]  ;;  %v205_v60 = vld [vmem:[#allocation7 + $0x3d8] sm:$0xff]  ;;  %v1031_v62 = vpack.c.bf16 %v206_v53, %v202_v52 }
  0x6a   :  { %1072 = vmatpush1.bf16.msra.mxu1 %v1071_v7  ;;  %v409_v59 = vld [vmem:[#allocation7 + $0x428] sm:$0xff]  ;;  %v209_v61 = vld [vmem:[#allocation7 + $0x3f8] sm:$0xff]  ;;  %v1091_v63 = vpack.c.bf16 %v200_v57, %v196_v55  ;;  %v204_v0 = vld [vmem:[#allocation7 + $0x3d0] sm:$0xff] }
  0x6b   :  { %1074 = vmatprep.subr.bf16.mxu1 %v1073_v9  ;;  %v408_v4 = vld [vmem:[#allocation7 + $0x420] sm:$0xff]  ;;  %v1093_v5 = vpack.c.bf16 %v209_v61, %v205_v60  ;;  %v208_v6 = vld [vmem:[#allocation7 + $0x3f0] sm:$0xff]  ;;  %v413_v7 = vld [vmem:[#allocation7 + $0x448] sm:$0xff] }
  0x6c   :  { %1012 = vmatpush1.bf16.msra.mxu0 %v1011_v2  ;;  %v1097_v2 = vpack.c.bf16 %v409_v59, %v405_v58  ;;  %v417_v8 = vld [vmem:[#allocation7 + $0x468] sm:$0xff]  ;;  %v407_v9 = vld [vmem:[#allocation7 + $0x418] sm:$0xff]  ;;  %v1095_v12 = vpack.c.bf16 %v208_v6, %v204_v0  ;;  %v406_v13 = vld [vmem:[#allocation7 + $0x410] sm:$0xff] }
  0x6d   :  { %1014 = vmatprep.subr.bf16.mxu0 %v1013_v3  ;;  %v404_v3 = vld [vmem:[#allocation7 + $0x400] sm:$0xff]  ;;  %v411_v10 = vld [vmem:[#allocation7 + $0x438] sm:$0xff]  ;;  %v410_v18 = vld [vmem:[#allocation7 + $0x430] sm:$0xff] }
  0x6e   :  { %1076 = vmatpush1.bf16.msra.mxu1 %v1075_v19  ;;  %v1099_v11 = vpack.c.bf16 %v408_v4, %v404_v3  ;;  %v416_v16 = vld [vmem:[#allocation7 + $0x460] sm:$0xff]  ;;  %v1161_v17 = vpack.c.bf16 %v411_v10, %v407_v9  ;;  %v421_v19 = vld [vmem:[#allocation7 + $0x488] sm:$0xff]  ;;  %v419_v22 = vld [vmem:[#allocation7 + $0x478] sm:$0xff]  ;;  %v1163_v24 = vpack.c.bf16 %v410_v18, %v406_v13 }
  0x6f   :  { %1078 = vmatprep.subr.bf16.mxu1 %v1077_v21  ;;  %v425_v20 = vld [vmem:[#allocation7 + $0x4a8] sm:$0xff]  ;;  %v415_v21 = vld [vmem:[#allocation7 + $0x458] sm:$0xff]  ;;  %v414_v25 = vld [vmem:[#allocation7 + $0x450] sm:$0xff] }
  0x70   :  { %1016 = vmatpush1.bf16.msra.mxu0 %v1015_v14  ;;  %v1101_v14 = vpack.c.bf16 %v417_v8, %v413_v7  ;;  %v424_v28 = vld [vmem:[#allocation7 + $0x4a0] sm:$0xff]  ;;  %v1165_v29 = vpack.c.bf16 %v419_v22, %v415_v21  ;;  %v418_v30 = vld [vmem:[#allocation7 + $0x470] sm:$0xff]  ;;  %v433_v32 = vld [vmem:[#allocation7 + $0x4e8] sm:$0xff] }
  0x71   :  { %1018 = vmatprep.subr.bf16.mxu0 %v1017_v15  ;;  %v412_v15 = vld [vmem:[#allocation7 + $0x440] sm:$0xff]  ;;  %v427_v34 = vld [vmem:[#allocation7 + $0x4b8] sm:$0xff]  ;;  %v1167_v36 = vpack.c.bf16 %v418_v30, %v414_v25  ;;  %v422_v37 = vld [vmem:[#allocation7 + $0x490] sm:$0xff] }
  0x72   :  { %1080 = vmatpush1.bf16.msra.mxu1 %v1079_v31  ;;  %v1103_v23 = vpack.c.bf16 %v416_v16, %v412_v15  ;;  %v429_v31 = vld [vmem:[#allocation7 + $0x4c8] sm:$0xff]  ;;  %v432_v40 = vld [vmem:[#allocation7 + $0x4e0] sm:$0xff]  ;;  %v426_v42 = vld [vmem:[#allocation7 + $0x4b0] sm:$0xff] }
  0x73   :  { %1082 = vmatprep.subr.bf16.mxu1 %v1081_v33  ;;  %v423_v33 = vld [vmem:[#allocation7 + $0x498] sm:$0xff]  ;;  %v441_v44 = vld [vmem:[#allocation7 + $0x528] sm:$0xff]  ;;  %v440_v57 = vld [vmem:[#allocation7 + $0x520] sm:$0xff] }
  0x74   :  { %1020 = vmatpush1.bf16.msra.mxu0 %v1019_v26  ;;  %v1105_v26 = vpack.c.bf16 %v425_v20, %v421_v19  ;;  %v1169_v41 = vpack.c.bf16 %v427_v34, %v423_v33  ;;  %v435_v46 = vld [vmem:[#allocation7 + $0x4f8] sm:$0xff]  ;;  %v438_v58 = vld [vmem:[#allocation7 + $0x510] sm:$0xff]  ;;  %v444_v4 = vld [vmem:[#allocation7 + $0x540] sm:$0xff] }
  0x75   :  { %1022 = vmatprep.subr.bf16.mxu0 %v1021_v27  ;;  %v420_v27 = vld [vmem:[#allocation7 + $0x480] sm:$0xff]  ;;  %v439_v52 = vld [vmem:[#allocation7 + $0x518] sm:$0xff]  ;;  %v442_v60 = vld [vmem:[#allocation7 + $0x530] sm:$0xff] }
  0x76   :  { %1084 = vmatpush1.bf16.msra.mxu1 %v1083_v43  ;;  %v1107_v35 = vpack.c.bf16 %v424_v28, %v420_v27  ;;  %v437_v43 = vld [vmem:[#allocation7 + $0x508] sm:$0xff]  ;;  %v443_v53 = vld [vmem:[#allocation7 + $0x538] sm:$0xff]  ;;  %v1179_v61 = vpack.c.bf16 %v442_v60, %v438_v58  ;;  %v446_v8 = vld [vmem:[#allocation7 + $0x550] sm:$0xff] }
  0x77   :  { %1086 = vmatprep.subr.bf16.mxu1 %v1085_v45  ;;  %v431_v45 = vld [vmem:[#allocation7 + $0x4d8] sm:$0xff]  ;;  %v1113_v48 = vpack.c.bf16 %v441_v44, %v437_v43  ;;  %v1177_v55 = vpack.c.bf16 %v443_v53, %v439_v52  ;;  %v450_v9 = vld [vmem:[#allocation7 + $0x570] sm:$0xff]  ;;  %v452_v16 = vld [vmem:[#allocation7 + $0x580] sm:$0xff] }
  0x78   :  { %1024 = vmatpush1.bf16.msra.mxu0 %v1023_v38  ;;  %v1109_v38 = vpack.c.bf16 %v433_v32, %v429_v31  ;;  %v1173_v49 = vpack.c.bf16 %v435_v46, %v431_v45  ;;  %v447_v0 = vld [vmem:[#allocation7 + $0x558] sm:$0xff]  ;;  %v1183_v10 = vpack.c.bf16 %v450_v9, %v446_v8  ;;  %v454_v20 = vld [vmem:[#allocation7 + $0x590] sm:$0xff]  ;;  %v460_v28 = vld [vmem:[#allocation7 + $0x5c0] sm:$0xff] }
  0x79   :  { %1026 = vmatprep.subr.bf16.mxu0 %v1025_v39  ;;  %v428_v39 = vld [vmem:[#allocation7 + $0x4c0] sm:$0xff]  ;;  %v451_v3 = vld [vmem:[#allocation7 + $0x578] sm:$0xff]  ;;  %v458_v21 = vld [vmem:[#allocation7 + $0x5b0] sm:$0xff] }
  0x7a   :  { %1088 = vmatpush1.bf16.msra.mxu1 %v1087_v54  ;;  %v1111_v47 = vpack.c.bf16 %v432_v40, %v428_v39  ;;  %v1181_v6 = vpack.c.bf16 %v451_v3, %v447_v0  ;;  %v455_v13 = vld [vmem:[#allocation7 + $0x598] sm:$0xff]  ;;  %v1187_v22 = vpack.c.bf16 %v458_v21, %v454_v20  ;;  %v462_v32 = vld [vmem:[#allocation7 + $0x5d0] sm:$0xff]  ;;  %v468_v40 = vld [vmem:[#allocation7 + $0x600] sm:$0xff] }
  0x7b   :  { %1090 = vmatprep.subr.bf16.mxu1 %v1089_v56  ;;  %v436_v56 = vld [vmem:[#allocation7 + $0x500] sm:$0xff]  ;;  %v459_v15 = vld [vmem:[#allocation7 + $0x5b8] sm:$0xff]  ;;  %v466_v33 = vld [vmem:[#allocation7 + $0x5f0] sm:$0xff] }
  0x7c   :  { %1028 = vmatpush1.bf16.msra.mxu0 %v1027_v50  ;;  %v430_v50 = vld [vmem:[#allocation7 + $0x4d0] sm:$0xff]  ;;  %v1115_v59 = vpack.c.bf16 %v440_v57, %v436_v56  ;;  %v1185_v18 = vpack.c.bf16 %v459_v15, %v455_v13  ;;  %v463_v25 = vld [vmem:[#allocation7 + $0x5d8] sm:$0xff]  ;;  %v1191_v34 = vpack.c.bf16 %v466_v33, %v462_v32  ;;  %v480_v52 = vld [vmem:[#allocation7 + $0x660] sm:$0xff] }
  0x7d   :  { %1030 = vmatprep.subr.bf16.mxu0 %v1029_v51  ;;  %v434_v51 = vld [vmem:[#allocation7 + $0x4f0] sm:$0xff]  ;;  %v467_v27 = vld [vmem:[#allocation7 + $0x5f8] sm:$0xff]  ;;  %v485_v58 = vld [vmem:[#allocation7 + $0x688] sm:$0xff] }
  0x7e   :  { %1092 = vmatpush1.bf16.msra.mxu1 %v1091_v63  ;;  %v1175_v54 = vpack.c.bf16 %v434_v51, %v430_v50  ;;  %v449_v63 = vld [vmem:[#allocation7 + $0x568] sm:$0xff]  ;;  %v1189_v30 = vpack.c.bf16 %v467_v27, %v463_v25  ;;  %v475_v39 = vld [vmem:[#allocation7 + $0x638] sm:$0xff]  ;;  %v470_v44 = vld [vmem:[#allocation7 + $0x610] sm:$0xff] }
  0x7f   :  { %1094 = vmatprep.subr.bf16.mxu1 %v1093_v5  ;;  %v448_v5 = vld [vmem:[#allocation7 + $0x560] sm:$0xff]  ;;  %v474_v45 = vld [vmem:[#allocation7 + $0x630] sm:$0xff]  ;;  %v483_v50 = vld [vmem:[#allocation7 + $0x678] sm:$0xff] }
  0x80   :  { %1032 = vmatpush1.bf16.msra.mxu0 %v1031_v62  ;;  %v445_v62 = vld [vmem:[#allocation7 + $0x548] sm:$0xff]  ;;  %v1119_v7 = vpack.c.bf16 %v448_v5, %v444_v4  ;;  %v1195_v46 = vpack.c.bf16 %v474_v45, %v470_v44  ;;  %v476_v51 = vld [vmem:[#allocation7 + $0x640] sm:$0xff]  ;;  %v482_v56 = vld [vmem:[#allocation7 + $0x670] sm:$0xff] }
  0x81   :  { %1098 = vmatprep.subr.bf16.mxu0 %v1097_v2  ;;  %v1117_v2 = vpack.c.bf16 %v449_v63, %v445_v62  ;;  %v487_v60 = vld [vmem:[#allocation7 + $0x698] sm:$0xff]  ;;  %v484_v63 = vld [vmem:[#allocation7 + $0x680] sm:$0xff]  ;;  %v486_v4 = vld [vmem:[#allocation7 + $0x690] sm:$0xff] }
  0x82   :  { %1096 = vmatpush1.bf16.msra.mxu1 %v1095_v12  ;;  %v457_v12 = vld [vmem:[#allocation7 + $0x5a8] sm:$0xff]  ;;  %v491_v62 = vld [vmem:[#allocation7 + $0x6b8] sm:$0xff]  ;;  %v488_v0 = vld [vmem:[#allocation7 + $0x6a0] sm:$0xff] }
  0x83   :  { %297 = vmatmul.mubr.f32.vlgmr.msra.gmra.mrb[0].mxu0 %v1609_v1  ;;  %1162 = vmatprep.subr.bf16.mxu1 %v1161_v17  ;;  %v456_v17 = vld [vmem:[#allocation7 + $0x5a0] sm:$0xff]  ;;  %v1139_v3 = vpack.c.bf16 %v488_v0, %v484_v63  ;;  %v490_v5 = vld [vmem:[#allocation7 + $0x6b0] sm:$0xff]  ;;  %v497_v8 = vld [vmem:[#allocation7 + $0x6e8] sm:$0xff] }
  0x84   :  { %1100 = vmatpush1.bf16.msra.mxu0 %v1099_v11  ;;  %v453_v11 = vld [vmem:[#allocation7 + $0x588] sm:$0xff]  ;;  %v1123_v19 = vpack.c.bf16 %v456_v17, %v452_v16  ;;  %v495_v9 = vld [vmem:[#allocation7 + $0x6d8] sm:$0xff]  ;;  %v496_v13 = vld [vmem:[#allocation7 + $0x6e0] sm:$0xff] }
  0x85   :  { %1102 = vmatprep.subr.bf16.mxu0 %v1101_v14  ;;  %368 = vmatmul.mubr.f32.vlgmr.msra.gmra.mrb[0].mxu1 %v1609_v1  ;;  %v1171_v1 = vpack.c.bf16 %v426_v42, %v422_v37  ;;  %v1121_v14 = vpack.c.bf16 %v457_v12, %v453_v11  ;;  %v471_v37 = vld [vmem:[#allocation7 + $0x618] sm:$0xff]  ;;  %v492_v12 = vld [vmem:[#allocation7 + $0x6c0] sm:$0xff]  ;;  %v494_v16 = vld [vmem:[#allocation7 + $0x6d0] sm:$0xff] }
  0x86   :  { %1164 = vmatpush1.bf16.msra.mxu1 %v1163_v24  ;;  %v465_v24 = vld [vmem:[#allocation7 + $0x5e8] sm:$0xff]  ;;  %v1193_v42 = vpack.c.bf16 %v475_v39, %v471_v37  ;;  %v499_v11 = vld [vmem:[#allocation7 + $0x6f8] sm:$0xff]  ;;  %v1143_v15 = vpack.c.bf16 %v496_v13, %v492_v12  ;;  %v498_v17 = vld [vmem:[#allocation7 + $0x6f0] sm:$0xff] }
  0x87   :  { %1166 = vmatprep.subr.bf16.mxu1 %v1165_v29  ;;  %v464_v29 = vld [vmem:[#allocation7 + $0x5e0] sm:$0xff]  ;;  %v505_v20 = vld [vmem:[#allocation7 + $0x728] sm:$0xff]  ;;  %v503_v21 = vld [vmem:[#allocation7 + $0x718] sm:$0xff] }
  0x88   :  { %1104 = vmatpush1.bf16.msra.mxu0 %v1103_v23  ;;  %v461_v23 = vld [vmem:[#allocation7 + $0x5c8] sm:$0xff]  ;;  %v1127_v31 = vpack.c.bf16 %v464_v29, %v460_v28  ;;  %v504_v25 = vld [vmem:[#allocation7 + $0x720] sm:$0xff]  ;;  %v502_v28 = vld [vmem:[#allocation7 + $0x710] sm:$0xff] }
  0x89   :  { %1106 = vmatprep.subr.bf16.mxu0 %v1105_v26  ;;  %v1125_v26 = vpack.c.bf16 %v465_v24, %v461_v23  ;;  %v507_v23 = vld [vmem:[#allocation7 + $0x738] sm:$0xff]  ;;  %v500_v24 = vld [vmem:[#allocation7 + $0x700] sm:$0xff]  ;;  %v506_v29 = vld [vmem:[#allocation7 + $0x730] sm:$0xff] }
  0x8a   :  { %1168 = vmatpush1.bf16.msra.mxu1 %v1167_v36  ;;  %v473_v36 = vld [vmem:[#allocation7 + $0x628] sm:$0xff]  ;;  %v1147_v27 = vpack.c.bf16 %v504_v25, %v500_v24  ;;  %v511_v33 = vld [vmem:[#allocation7 + $0x758] sm:$0xff]  ;;  %v512_v37 = vld [vmem:[#allocation7 + $0x760] sm:$0xff] }
  0x8b   :  { %1170 = vmatprep.subr.bf16.mxu1 %v1169_v41  ;;  %v472_v41 = vld [vmem:[#allocation7 + $0x620] sm:$0xff]  ;;  %v513_v32 = vld [vmem:[#allocation7 + $0x768] sm:$0xff]  ;;  %v519_v45 = vld [vmem:[#allocation7 + $0x798] sm:$0xff] }
  0x8c   :  { %1108 = vmatpush1.bf16.msra.mxu0 %v1107_v35  ;;  %v469_v35 = vld [vmem:[#allocation7 + $0x608] sm:$0xff]  ;;  %v1131_v43 = vpack.c.bf16 %v472_v41, %v468_v40  ;;  %v510_v40 = vld [vmem:[#allocation7 + $0x750] sm:$0xff] }
  0x8d   :  { %1110 = vmatprep.subr.bf16.mxu0 %v1109_v38  ;;  %v1129_v38 = vpack.c.bf16 %v473_v36, %v469_v35  ;;  %v515_v35 = vld [vmem:[#allocation7 + $0x778] sm:$0xff]  ;;  %v508_v36 = vld [vmem:[#allocation7 + $0x740] sm:$0xff]  ;;  %v514_v41 = vld [vmem:[#allocation7 + $0x770] sm:$0xff] }
  0x8e   :  { %1172 = vmatpush1.bf16.msra.mxu1 %v1171_v1  ;;  %v481_v1 = vld [vmem:[#allocation7 + $0x668] sm:$0xff]  ;;  %v1151_v39 = vpack.c.bf16 %v512_v37, %v508_v36  ;;  %v530_v63 = vld [vmem:[#allocation7 + $0x7f0] sm:$0xff] }
  0x8f   :  { %1174 = vmatprep.subr.bf16.mxu1 %v1173_v49  ;;  %v521_v44 = vld [vmem:[#allocation7 + $0x7a8] sm:$0xff] }
  0x90   :  { %1112 = vmatpush1.bf16.msra.mxu0 %v1111_v47  ;;  %v477_v47 = vld [vmem:[#allocation7 + $0x648] sm:$0xff] }
  0x91   :  { %1114 = vmatprep.subr.bf16.mxu0 %v1113_v48  ;;  %v479_v48 = vld [vmem:[#allocation7 + $0x658] sm:$0xff]  ;;  %v1133_v49 = vpack.c.bf16 %v481_v1, %v477_v47 }
  0x92   :  { %1176 = vmatpush1.bf16.msra.mxu1 %v1175_v54  ;;  %v1197_v53 = vpack.c.bf16 %v483_v50, %v479_v48  ;;  %v1135_v54 = vpack.c.bf16 %v480_v52, %v476_v51  ;;  %v516_v48 = vld [vmem:[#allocation7 + $0x780] sm:$0xff]  ;;  %v518_v50 = vld [vmem:[#allocation7 + $0x790] sm:$0xff] }
  0x93   :  { %1178 = vmatprep.subr.bf16.mxu1 %v1177_v55  ;;  %v478_v55 = vld [vmem:[#allocation7 + $0x650] sm:$0xff] }
  0x94   :  { %1116 = vmatpush1.bf16.msra.mxu0 %v1115_v59  ;;  %v1199_v57 = vpack.c.bf16 %v482_v56, %v478_v55  ;;  %v489_v59 = vld [vmem:[#allocation7 + $0x6a8] sm:$0xff]  ;;  %v522_v52 = vld [vmem:[#allocation7 + $0x7b0] sm:$0xff] }
  0x95   :  { %1118 = vmatprep.subr.bf16.mxu0 %v1117_v2  ;;  %v1201_v2 = vpack.c.bf16 %v491_v62, %v487_v60  ;;  %v1219_v55 = vpack.c.bf16 %v522_v52, %v518_v50  ;;  %v526_v62 = vld [vmem:[#allocation7 + $0x7d0] sm:$0xff]  ;;  %v734_v52 = vld [vmem:[#allocation9 + $0x38] sm:$0xff] }
  0x96   :  { %1180 = vmatpush1.bf16.msra.mxu1 %v1179_v61  ;;  %v1137_v61 = vpack.c.bf16 %v489_v59, %v485_v58  ;;  %v531_v58 = vld [vmem:[#allocation7 + $0x7f8] sm:$0xff]  ;;  %v524_v59 = vld [vmem:[#allocation7 + $0x7c0] sm:$0xff] }
  0x97   :  { %1182 = vmatprep.subr.bf16.mxu1 %v1181_v6  ;;  %v1203_v6 = vpack.c.bf16 %v490_v5, %v486_v4  ;;  %v212_v4 = vlaneseq }
  0x98   :  { %1120 = vmatpush1.bf16.msra.mxu0 %v1119_v7  ;;  %v493_v7 = vld [vmem:[#allocation7 + $0x6c8] sm:$0xff] }
  0x99   :  { %1122 = vmatprep.subr.bf16.mxu0 %v1121_v14  ;;  %v1205_v14 = vpack.c.bf16 %v499_v11, %v495_v9  ;;  %v1618_v5 = vshrl.u32 %v212_v4, 7 }
  0x9a   :  { %1184 = vmatpush1.bf16.msra.mxu1 %v1183_v10  ;;  %v1141_v10 = vpack.c.bf16 %v497_v8, %v493_v7  ;;  %v210_v7 = vld [vmem:[%s1742_s5] sm:$0xf] }
  0x9b   :  { %1186 = vmatprep.subr.bf16.mxu1 %v1185_v18  ;;  %v1207_v18 = vpack.c.bf16 %v498_v17, %v494_v16  ;;  %v218_v8 = vsub.s32 1, %v1618_v5  ;;  %v226_v11 = vsub.s32 3, %v1618_v5 }
  0x9c   :  { %1124 = vmatpush1.bf16.msra.mxu0 %v1123_v19  ;;  %v501_v19 = vld [vmem:[#allocation7 + $0x708] sm:$0xff] }
  0x9d   :  { %1126 = vmatprep.subr.bf16.mxu0 %v1125_v26  ;;  %v1209_v26 = vpack.c.bf16 %v507_v23, %v503_v21  ;;  %v227_v17 = vrot.slane %v210_v7, %v226_v11 }
  0x9e   :  { %1188 = vmatpush1.bf16.msra.mxu1 %v1187_v22  ;;  %v1145_v22 = vpack.c.bf16 %v505_v20, %v501_v19  ;;  %v222_v19 = vsub.s32 2, %v1618_v5 }
  0x9f   :  { %1190 = vmatprep.subr.bf16.mxu1 %v1189_v30  ;;  %v1211_v30 = vpack.c.bf16 %v506_v29, %v502_v28 }
  0xa0   :  { %1128 = vmatpush1.bf16.msra.mxu0 %v1127_v31  ;;  %v509_v31 = vld [vmem:[#allocation7 + $0x748] sm:$0xff]  ;;  %v223_v23 = vrot.slane %v210_v7, %v222_v19 }
  0xa1   :  { %1130 = vmatprep.subr.bf16.mxu0 %v1129_v38  ;;  %v1213_v38 = vpack.c.bf16 %v515_v35, %v511_v33 }
  0xa2   :  { %1192 = vmatpush1.bf16.msra.mxu1 %v1191_v34  ;;  %v1149_v34 = vpack.c.bf16 %v513_v32, %v509_v31  ;;  %v393_v32 = vld [vmem:[%s1740_s3] sm:$0x1] }
  0xa3   :  { %1194 = vmatprep.subr.bf16.mxu1 %v1193_v42  ;;  %v517_v42 = vld [vmem:[#allocation7 + $0x788] sm:$0xff] }
  0xa4   :  { %1132 = vmatpush1.bf16.msra.mxu0 %v1131_v43  ;;  %v1215_v43 = vpack.c.bf16 %v514_v41, %v510_v40  ;;  %v1153_v47 = vpack.c.bf16 %v521_v44, %v517_v42  ;;  %v727_v42 = vld [vmem:[#allocation9] sm:$0xff] }
  0xa5   :  { %1134 = vmatprep.subr.bf16.mxu0 %v1133_v49  ;;  %v520_v49 = vld [vmem:[#allocation7 + $0x7a0] sm:$0xff] }
  0xa6   :  { %1196 = vmatpush1.bf16.msra.mxu1 %v1195_v46  ;;  %v523_v46 = vld [vmem:[#allocation7 + $0x7b8] sm:$0xff]  ;;  %v1155_v51 = vpack.c.bf16 %v520_v49, %v516_v48  ;;  %v731_v48 = vld [vmem:[#allocation9 + $0x20] sm:$0xff]  ;;  %v732_v49 = vld [vmem:[#allocation9 + $0x28] sm:$0xff] }
  0xa7   :  { %1198 = vmatprep.subr.bf16.mxu1 %v1197_v53  ;;  %v1217_v1 = vpack.c.bf16 %v523_v46, %v519_v45  ;;  %v525_v53 = vld [vmem:[#allocation7 + $0x7c8] sm:$0xff]  ;;  %v1494_v45 = vmov 0.0|0.0   ;;  %v729_v46 = vld [vmem:[#allocation9 + $0x10] sm:$0xff]  ;;  %v1232_v50 = vpack.c.bf16 %v732_v49, %v731_v48 }
  0xa8   :  { %1136 = vmatpush1.bf16.msra.mxu0 %v1135_v54  ;;  %v529_v54 = vld [vmem:[#allocation7 + $0x7e8] sm:$0xff] }
  0xa9   :  { %1138 = vmatprep.subr.bf16.mxu0 %v1137_v61  ;;  %v1157_v56 = vpack.c.bf16 %v529_v54, %v525_v53  ;;  %v528_v61 = vld [vmem:[#allocation7 + $0x7e0] sm:$0xff] }
  0xaa   :  { %1200 = vmatpush1.bf16.msra.mxu1 %v1199_v57  ;;  %v527_v57 = vld [vmem:[#allocation7 + $0x7d8] sm:$0xff]  ;;  %v1159_v0 = vpack.c.bf16 %v528_v61, %v524_v59  ;;  %v735_v54 = vld [vmem:[#allocation9 + $0x40] sm:$0xff]  ;;  %v740_v61 = vld [vmem:[#allocation9 + $0x68] sm:$0xff] }
  0xab   :  { %1202 = vmatprep.subr.bf16.mxu1 %v1201_v2  ;;  %v1221_v60 = vpack.c.bf16 %v531_v58, %v527_v57  ;;  %v911_v2 = vld [vmem:[%s1739_s2 + $0x1] sm:$0x1]  ;;  %v737_v57 = vld [vmem:[#allocation9 + $0x50] sm:$0xff]  ;;  %v739_v59 = vld [vmem:[#allocation9 + $0x60] sm:$0xff] }
  0xac   :  { %1140 = vmatpush1.bf16.msra.mxu0 %v1139_v3  ;;  %v1223_v3 = vpack.c.bf16 %v530_v63, %v526_v62  ;;  %619 = vmatprep.mubr.f32.mxu0 %v911_v2  ;;  %v738_v58 = vld [vmem:[#allocation9 + $0x58] sm:$0xff]  ;;  %v1496_v62 = vmov 0.0   ;;  %v1244_v63 = vpack.c.bf16 %v740_v61, %v739_v59 }
  0xad   :  { %1142 = vmatprep.subr.bf16.mxu0 %v1141_v10  ;;  %690 = vmatprep.mubr.f32.mxu1 %v911_v2  ;;  %v219_v10 = vrot.slane %v210_v7, %v218_v8  ;;  %v742_v2 = vld [vmem:[#allocation9 + $0x78] sm:$0xff] }
  0xae   :  { %1204 = vmatpush1.bf16.msra.mxu1 %v1203_v6  ;;  %v214_v6 = vsub.s32 0, %v1618_v5 }
  0xaf   :  { %1206 = vmatprep.subr.bf16.mxu1 %v1205_v14 }
  0xb0   :  { %1144 = vmatpush1.bf16.msra.mxu0 %v1143_v15  ;;  %v215_v9 = vrot.slane %v210_v7, %v214_v6  ;;  %v912_v7 = vld [vmem:[%s1742_s5 + $0x4] sm:$0xf] }
  0xb1   :  { %1146 = vmatprep.subr.bf16.mxu0 %v1145_v22 }
  0xb2   :  { %1208 = vmatpush1.bf16.msra.mxu1 %v1207_v18 }
  0xb3   :  { %1210 = vmatprep.subr.bf16.mxu1 %v1209_v26 }
  0xb4   :  { %1148 = vmatpush1.bf16.msra.mxu0 %v1147_v27 }
  0xb5   :  { %1150 = vmatprep.subr.bf16.mxu0 %v1149_v34 }
  0xb6   :  { %1212 = vmatpush1.bf16.msra.mxu1 %v1211_v30 }
  0xb7   :  { %1214 = vmatprep.subr.bf16.mxu1 %v1213_v38 }
  0xb8   :  { %1152 = vmatpush1.bf16.msra.mxu0 %v1151_v39 }
  0xb9   :  { %1154 = vmatprep.subr.bf16.mxu0 %v1153_v47  ;;  %v730_v47 = vld [vmem:[#allocation9 + $0x18] sm:$0xff] }
  0xba   :  { %1216 = vmatpush1.bf16.msra.mxu1 %v1215_v43  ;;  %v728_v43 = vld [vmem:[#allocation9 + $0x8] sm:$0xff] }
  0xbb   :  { %1218 = vmatprep.subr.bf16.mxu1 %v1217_v1  ;;  %v1226_v44 = vpack.c.bf16 %v728_v43, %v727_v42  ;;  %v1229_v1 = vpack.c.bf16 %v730_v47, %v729_v46 }
  0xbc   :  { %1156 = vmatpush1.bf16.msra.mxu0 %v1155_v51  ;;  %v733_v51 = vld [vmem:[#allocation9 + $0x30] sm:$0xff] }
  0xbd   :  { %1158 = vmatprep.subr.bf16.mxu0 %v1157_v56  ;;  %v1235_v53 = vpack.c.bf16 %v734_v52, %v733_v51 }
  0xbe   :  { %1220 = vmatpush1.bf16.msra.mxu1 %v1219_v55  ;;  %v736_v55 = vld [vmem:[#allocation9 + $0x48] sm:$0xff] }
  0xbf   :  { %1222 = vmatprep.subr.bf16.mxu1 %v1221_v60  ;;  %v1238_v56 = vpack.c.bf16 %v736_v55, %v735_v54  ;;  %v1241_v60 = vpack.c.bf16 %v738_v58, %v737_v57 }
  0xc0   :  { %1160 = vmatpush1.bf16.msra.mxu0 %v1159_v0  ;;  %v741_v0 = vld [vmem:[#allocation9 + $0x70] sm:$0xff] }
  0xc1   :  { %1225 = vmatprep.subr.bf16.mxu0 %v1494_v45 }
  0xc2   :  { %1224 = vmatpush1.bf16.msra.mxu1 %v1223_v3  ;;  %v1247_v3 = vpack.c.bf16 %v742_v2, %v741_v0 }
 0x156   :  { %v298_v12 = vpop.f32.mrb[0].mxu0 }
 0x157   :  { %v299_v13 = vadd.f32 %v298_v12, %v215_v9  ;;  %v300_v14 = vpop.f32.mrb[1].mxu0  ;;  %v538_v9 = vrot.slane %v912_v7, %v214_v6  ;;  %v546_v6 = vrot.slane %v912_v7, %v222_v19 }
 0x158   :  { %v301_v15 = vadd.f32 %v300_v14, %v219_v10  ;;  %v369_v20 = vpop.f32.mrb[0].mxu1  ;;  %v542_v10 = vrot.slane %v912_v7, %v218_v8 }
 0x159   :  { %v908_v16 = vmul.f32 -1.442695, %v299_v13  ;;  %v371_v21 = vpop.f32.mrb[1].mxu1  ;;  %v370_v25 = vadd.f32 %v369_v20, %v223_v23 }
 0x15a   :  { %v909_v18 = vmul.f32 -1.442695, %v301_v15  ;;  %v372_v22 = vadd.f32 %v371_v21, %v227_v17  ;;  %v550_v21 = vrot.slane %v912_v7, %v226_v11  ;;  %v916_v11 = vld [vmem:[%s1740_s3 + $0x1] sm:$0x1]  ;;  %s1497_s3 = smov [#allocation11]  }
 0x15b   :  { %1267 = vpow2.f32 %v908_v16  ;;  %s846_s1 = sshll.u32 %s1497_s3, 4  ;;  %s847_s1 = int_to_ptr.vmem [resolvable:$true] %s846_s1 }
 0x15c   :  { %1269 = vpow2.f32 %v909_v18  ;;  %v910_v24 = vmul.f32 -1.442695, %v372_v22  ;;  %p1372_p1 = scmp.lt.s32.totalorder %s847_s1, %s847_s1 }
 0x15e   :  { %1271 = vpow2.f32 %v910_v24 }
 0x15f   :  { %1273 = vtanh.f32 %v370_v25 }
 0x165   :  { %v1268_v26 = vpop.eup %1267 }
 0x166   :  { %v1270_v27 = vpop.eup %1269  ;;  %v377_v28 = vadd.f32 1.0, %v1268_v26 }
 0x167   :  { %v383_v29 = vadd.f32 1.0, %v1270_v27 }
 0x168   :  { %1275 = vrcp.f32 %v377_v28  ;;  %v1272_v30 = vpop.eup %1271 }
 0x169   :  { %1277 = vrcp.f32 %v383_v29  ;;  %v1274_v31 = vpop.eup %1273  ;;  %v390_v34 = vadd.f32 1.0, %v1272_v30 }
 0x16b   :  { %1279 = vrcp.f32 %v390_v34 }
 0x172   :  { %v1276_v33 = vpop.eup %1275 }
 0x173   :  { %v1278_v35 = vpop.eup %1277  ;;  %v395_v36 = vmul.f32 %v1276_v33, %v1274_v31 }
 0x174   :  { %v394_v37 = vmul.f32 %v1278_v35, %v393_v32 }
 0x175   :  { %v1280_v39 = vpop.eup %1279 }
 0x176   :  { %v396_v38 = vadd.f32 %v395_v36, %v394_v37  ;;  %v816_v37 = vand.u32 127, %v212_v4 }
 0x178   :  { %1281 = vtanh.f32 %v396_v38  ;;  %400 = vst [vmem:[#allocation13] sm:$0x1] %v396_v38  ;;  %v743_v38 = vld [vmem:[%s1744_s7] sm:$0x1]  ;;  %vm817_vm1 = vcmp.eq.s32.totalorder %v816_v37, 0  ;;  %vm823_vm3 = vcmp.eq.s32.totalorder %v816_v37, 1 }
 0x179   :  { %s1367_s7 = scalar_lea.vmem %s847_s1, 32 }
 0x17a   :  { %p1368_p0 = scmp.ne.s32.totalorder %s847_s1, %s1367_s7  ;;  %p1373_p2 = scmp.lt.s32.totalorder %s1367_s7, %s1367_s7 }
 0x17c   :  { %p1374_p3 = por %p1373_p2, %p1372_p1 }
 0x17e   :  { %p1375_p4 = pnand %p1374_p3, %p1368_p0 }
 0x182   :  { %v1282_v40 = vpop.eup %1281 }
 0x183   :  { %v398_v41 = vmul.f32 %v1282_v40, %v1280_v39 }
 0x185   :  { %620 = vmatmul.mubr.f32.vlgmr.msra.gmra.mrb[2].mxu0 %v398_v41  ;;  %399 = vst [vmem:[#allocation11] sm:$0x1] %v398_v41  ;;  %691 = vmatmul.mubr.f32.vlgmr.msra.gmra.mrb[2].mxu1 %v398_v41 }
 0x186   :  { %1227 = vmatpush3.bf16.msra.mxu0 %v1226_v44  ;;  %966 = vmatprep.mubr.msk.f32.mxu0 %vm1495_vm0, %v1496_v62 }
 0x187   :  { %1228 = vmatprep.subr.bf16.mxu0 %v1494_v45 }
 0x18a   :  { %1230 = vmatpush3.bf16.msra.mxu0 %v1229_v1 }
 0x18b   :  { %1231 = vmatprep.subr.bf16.mxu0 %v1494_v45 }
 0x18e   :  { %1233 = vmatpush3.bf16.msra.mxu0 %v1232_v50 }
 0x18f   :  { %1234 = vmatprep.subr.bf16.mxu0 %v1494_v45 }
 0x192   :  { %1236 = vmatpush3.bf16.msra.mxu0 %v1235_v53 }
 0x193   :  { %1237 = vmatprep.subr.bf16.mxu0 %v1494_v45 }
 0x196   :  { %1239 = vmatpush3.bf16.msra.mxu0 %v1238_v56 }
 0x197   :  { %1240 = vmatprep.subr.bf16.mxu0 %v1494_v45 }
 0x19a   :  { %1242 = vmatpush3.bf16.msra.mxu0 %v1241_v60 }
 0x19b   :  { %1243 = vmatprep.subr.bf16.mxu0 %v1494_v45 }
 0x19e   :  { %1245 = vmatpush3.bf16.msra.mxu0 %v1244_v63 }
 0x19f   :  { %1246 = vmatprep.subr.bf16.mxu0 %v1494_v45 }
 0x1a2   :  { %1248 = vmatpush3.bf16.msra.mxu0 %v1247_v3 }
 0x258   :  { %v621_v12 = vpop.f32.mrb[2].mxu0  ;;  %v692_v13 = vpop.f32.mrb[2].mxu1 }
 0x259   :  { %v622_v14 = vadd.f32 %v621_v12, %v538_v9  ;;  %v623_v15 = vpop.f32.mrb[3].mxu0  ;;  %v694_v16 = vpop.f32.mrb[3].mxu1  ;;  %v693_v24 = vadd.f32 %v692_v13, %v546_v6 }
 0x25a   :  { %v624_v17 = vadd.f32 %v623_v15, %v542_v10  ;;  %v695_v22 = vadd.f32 %v694_v16, %v550_v21 }
 0x25b   :  { %v913_v18 = vmul.f32 -1.442695, %v622_v14 }
 0x25c   :  { %v914_v20 = vmul.f32 -1.442695, %v624_v17  ;;  %v915_v23 = vmul.f32 -1.442695, %v695_v22 }
 0x25d   :  { %1283 = vpow2.f32 %v913_v18 }
 0x25e   :  { %1285 = vpow2.f32 %v914_v20 }
 0x25f   :  { %1287 = vpow2.f32 %v915_v23 }
 0x260   :  { %1289 = vtanh.f32 %v693_v24 }
 0x267   :  { %v1284_v8 = vpop.eup %1283 }
 0x268   :  { %v1286_v25 = vpop.eup %1285  ;;  %v700_v26 = vadd.f32 1.0, %v1284_v8 }
 0x269   :  { %v706_v27 = vadd.f32 1.0, %v1286_v25  ;;  %v1288_v28 = vpop.eup %1287 }
 0x26a   :  { %1291 = vrcp.f32 %v700_v26  ;;  %v1290_v29 = vpop.eup %1289  ;;  %v713_v19 = vadd.f32 1.0, %v1288_v28 }
 0x26b   :  { %1293 = vrcp.f32 %v706_v27 }
 0x26c   :  { %1295 = vrcp.f32 %v713_v19 }
 0x274   :  { %v1292_v30 = vpop.eup %1291 }
 0x275   :  { %v1294_v31 = vpop.eup %1293  ;;  %v719_v5 = vmul.f32 %v1292_v30, %v1290_v29 }
 0x276   :  { %v718_v32 = vmul.f32 %v1294_v31, %v916_v11  ;;  %v1296_v34 = vpop.eup %1295 }
 0x278   :  { %v720_v33 = vadd.f32 %v719_v5, %v718_v32 }
 0x27a   :  { %726 = vst [vmem:[#allocation13 + $0x1] sm:$0x1] %v720_v33  ;;  %1297 = vtanh.f32 %v720_v33 }
 0x284   :  { %v1298_v35 = vpop.eup %1297 }
 0x285   :  { %v722_v36 = vmul.f32 %v1298_v35, %v1296_v34 }
 0x287   :  { %967 = vmatmul.mubr.f32.vlgmr.msra.gmra.mrb[4].mxu0 %v722_v36  ;;  %724 = vst [vmem:[#allocation11 + $0x1] sm:$0x1] %v722_v36 }
 0x35a   :  { %v810_v39 = vpop.f32.mrb[4].mxu0 }
 0x35b   :  { %v811_v40 = vadd.f32 %v810_v39, %v743_v38  ;;  %v968_v41 = vpop.f32.mrb[5].mxu0 }
 0x35d   :  { %814 = vst [vmem:[#allocation14] sm:$0x1] %v811_v40  ;;  %v818_v42 = vsel %vm817_vm1, %v811_v40, 0.0  ;;  %v824_v44 = vsel %vm823_vm3, %v811_v40, 0.0 }
 0x35e   :  { %v820_v43 = vsel %vm819_vm2, %v818_v42, 0.0  ;;  %v825_v45 = vsel %vm819_vm2, %v824_v44, 0.0 }
 0x35f   :  { %821 = vadd.xlane.f32.xlu0 %v820_v43 }
 0x363   :  { %826 = vadd.xlane.f32.xlu0 %v825_v45 }
 0x364   :  { %1378 = shalt.err (!%p1375_p4)
}
 0x365   :  { %s1379_s20 = scalar_lea.hbm %s1746_s9, 32 }
 0x366   :  { %p1380_p5 = scmp.ne.s32.totalorder %s1746_s9, %s1379_s20  ;;  %p1383_p6 = scmp.lt.u32.totalorder %s1379_s20, %s1746_s9 }
 0x368   :  { %p1385_p7 = pnand %p1383_p6, %p1380_p5 }
 0x36a   :  { %1388 = shalt.err (!%p1385_p7)
}
 0x36b   :  { %s1499_s6 = smov 16   ;;  %s1500_s27 = smov 1  }
 0x36c   :  { %852 = dma.vmem_to_hbm [thread:$0]  %s847_s1, 32, %s1746_s9, [#allocation12], %s1499_s6, %s1499_s6, %s1500_s27  }
 0x36d   :  { %s1389_s30 = scalar_lea.vmem %s1656_s17, 16  ;;  %s1393_s13 = scalar_lea.vmem %s1656_s17, 32 }
 0x36e   :  { %p1390_p8 = scmp.ne.s32.totalorder %s1656_s17, %s1389_s30  ;;  %p1394_p9 = scmp.lt.s32.totalorder %s1656_s17, %s1656_s17 }
 0x36f   :  { %p1395_p10 = scmp.lt.s32.totalorder %s1393_s13, %s1389_s30 }
 0x371   :  { %p1396_p11 = por %p1395_p10, %p1394_p9 }
 0x373   :  { %p1397_p12 = pnand %p1396_p11, %p1390_p8 }
 0x375   :  { %1400 = shalt.err (!%p1397_p12)
}
 0x376   :  { %s1401_s15 = scalar_lea.hbm %s1748_s11, 16 }
 0x377   :  { %p1402_p13 = scmp.ne.s32.totalorder %s1748_s11, %s1401_s15  ;;  %p1405_p0 = scmp.lt.u32.totalorder %s1401_s15, %s1748_s11 }
 0x379   :  { %p1407_p1 = pnand %p1405_p0, %p1402_p13 }
 0x37b   :  { %1410 = shalt.err (!%p1407_p1)
}
 0x37c   :  { %874 = dma.vmem_to_hbm [thread:$0]  %s1656_s17, 16, %s1748_s11, [#allocation15]  }
 0x37d   :  { %s1501_s3 = smov [#allocation10]   ;;  %s1502_s16 = smov [#allocation13]  }
 0x37e   :  { %s837_s1 = sshll.u32 %s1501_s3, 4  ;;  %s858_s7 = sshll.u32 %s1502_s16, 4  ;;  %s838_s1 = int_to_ptr.vmem [resolvable:$true] %s837_s1  ;;  %s1691_s7 = int_to_ptr.vmem [resolvable:$true] %s858_s7 }
 0x37f   :  { %s1411_s18 = scalar_lea.vmem %s838_s1, 16  ;;  %s1415_s19 = scalar_lea.vmem %s838_s1, 32 }
 0x380   :  { %p1412_p2 = scmp.ne.s32.totalorder %s838_s1, %s1411_s18  ;;  %p1416_p3 = scmp.lt.s32.totalorder %s838_s1, %s838_s1 }
 0x381   :  { %p1417_p4 = scmp.lt.s32.totalorder %s1415_s19, %s1411_s18 }
 0x383   :  { %p1418_p5 = por %p1417_p4, %p1416_p3 }
 0x385   :  { %p1419_p6 = pnand %p1418_p5, %p1412_p2 }
 0x387   :  { %1422 = shalt.err (!%p1419_p6)
}
 0x388   :  { %s1423_s23 = scalar_lea.hbm %s1745_s8, 16 }
 0x389   :  { %p1424_p7 = scmp.ne.s32.totalorder %s1745_s8, %s1423_s23  ;;  %p1427_p8 = scmp.lt.u32.totalorder %s1423_s23, %s1745_s8 }
 0x38b   :  { %p1429_p9 = pnand %p1427_p8, %p1424_p7 }
 0x38d   :  { %1432 = shalt.err (!%p1429_p9)
}
 0x38e   :  { %840 = dma.vmem_to_hbm [thread:$0]  %s838_s1, 16, %s1745_s8, [#allocation6]  }
 0x38f   :  { %s1433_s30 = scalar_lea.vmem %s1691_s7, 32  ;;  %p1438_p11 = scmp.lt.s32.totalorder %s1691_s7, %s1691_s7 }
 0x390   :  { %p1434_p10 = scmp.ne.s32.totalorder %s1691_s7, %s1433_s30  ;;  %p1439_p12 = scmp.lt.s32.totalorder %s1433_s30, %s1433_s30 }
 0x392   :  { %p1440_p13 = por %p1439_p12, %p1438_p11 }
 0x394   :  { %p1441_p0 = pnand %p1440_p13, %p1434_p10 }
 0x396   :  { %1444 = shalt.err (!%p1441_p0)
}
 0x397   :  { %s1445_s14 = scalar_lea.hbm %s1747_s10, 32 }
 0x398   :  { %p1446_p1 = scmp.ne.s32.totalorder %s1747_s10, %s1445_s14  ;;  %p1449_p2 = scmp.lt.u32.totalorder %s1445_s14, %s1747_s10 }
 0x39a   :  { %p1451_p3 = pnand %p1449_p2, %p1446_p1 }
 0x39c   :  { %1454 = shalt.err (!%p1451_p3)
}
 0x39d   :  { %864 = dma.vmem_to_hbm [thread:$0]  %s1691_s7, 32, %s1747_s10, [#allocation12], %s1499_s6, %s1499_s6, %s1500_s27   ;;  %v1504_v47 = vmov 0  }
 0x39e   :  { %s1503_s9 = smov [#allocation16]  }
 0x39f   :  { %s881_s0 = sshll.u32 %s1503_s9, 4  ;;  %s882_s0 = int_to_ptr.vmem [resolvable:$true] %s881_s0 }
 0x3a0   :  { %s1455_s3 = scalar_lea.vmem %s882_s0, 16  ;;  %s1459_s1 = scalar_lea.vmem %s882_s0, 32 }
 0x3a1   :  { %p1456_p4 = scmp.ne.s32.totalorder %s882_s0, %s1455_s3  ;;  %p1460_p5 = scmp.lt.s32.totalorder %s882_s0, %s882_s0 }
 0x3a2   :  { %p1461_p6 = scmp.lt.s32.totalorder %s1459_s1, %s1455_s3 }
 0x3a4   :  { %p1462_p7 = por %p1461_p6, %p1460_p5 }
 0x3a6   :  { %p1463_p8 = pnand %p1462_p7, %p1456_p4 }
 0x3ec   :  { %v822_v4 = vpop.xlane.xlu0 %821 }
 0x3f0   :  { %v827_v46 = vpop.xlane.xlu0 %826 }
 0x3f1   :  { %vm828_vm4 = vcmp.gt.f32.partialorder %v827_v46, %v822_v4 }
 0x3f2   :  { %v829_v1 = vsel %vm828_vm4, 1, %v1504_v47 }
 0x3f3   :  { %830 = vst [vmem:[#allocation16] sm:$0x1] %v829_v1 }
 0x3f4   :  { %1466 = shalt.err (!%p1463_p8)
}
 0x3f5   :  { %s1467_s10 = scalar_lea.hbm %s1749_s12, 16 }
 0x3f6   :  { %p1468_p9 = scmp.ne.s32.totalorder %s1749_s12, %s1467_s10  ;;  %p1471_p10 = scmp.lt.u32.totalorder %s1467_s10, %s1749_s12 }
 0x3f8   :  { %p1473_p11 = pnand %p1471_p10, %p1468_p9 }
 0x3fa   :  { %1476 = shalt.err (!%p1473_p11)
}
 0x3fb   :  { %884 = dma.vmem_to_hbm [thread:$0]  %s882_s0, 16, %s1749_s12, [#allocation15]  }
 0x3fc   :  { %1481 = dma.done.wait [#allocation6], 16  }
 0x3fd   :  { %1482 = vsyncadd [#allocation6], 4294967280 }
 0x3fe   :  { %1483 = dma.done.wait [#allocation12], 64  }
 0x3ff   :  { %1484 = vsyncadd [#allocation12], 4294967232 }
 0x400   :  { %1485 = dma.done.wait [#allocation15], 32  }
 0x401   :  { %1486 = vsyncadd [#allocation15], 4294967264 }
 0x402   :  { %900 = vsyncpa [#allocation5], 1 }
 0x403   :  { %901 = vsyncpa [#allocation8], 1 }
 0x404   :  { %902 = vsyncpa [#allocation6], 1 }
 0x405   :  { %903 = vsyncpa [#allocation12], 1 }
 0x406   :  { %904 = vsyncpa [#allocation15], 1 }

</bundles_post_ra>
